<compile_context>
chip_gen: v6e
topology: v6e:2x2x1
jax: 0.10.0
libtpu: 0.0.40
codegen_flags: <defaults>
</compile_context>

<pallas_src>
import jax
import jax.numpy as jnp
from jax.experimental import pallas as pl
from jax.experimental.pallas import tpu as pltpu


def _mlp_kernel(x_ref, w1_ref, b1_ref, w2_ref, b2_ref, w3_ref, b3_ref, o_ref):
    compute_dtype = w1_ref.dtype  # bf16 (or f32 if use_bf16=False)

    # layer1 (+ eval-mode dropout = identity) + ReLU
    h1 = jnp.dot(x_ref[...], w1_ref[...], preferred_element_type=jnp.float32)
    h1 = jnp.maximum(h1 + b1_ref[...], 0.0)

    # layer2 (+ eval-mode dropout = identity) + ReLU
    h2 = jnp.dot(h1.astype(compute_dtype), w2_ref[...],
                 preferred_element_type=jnp.float32)
    h2 = jnp.maximum(h2 + b2_ref[...], 0.0)

    # layer3: out_features == 1 -> MXU would use 1/128 of the result path.
    # Do it on the VPU (broadcast multiply) + lane reduction instead.
    logit = jnp.sum(h2 * w3_ref[...], axis=-1, keepdims=True) + b3_ref[...]

    o_ref[...] = jax.nn.sigmoid(logit).astype(o_ref.dtype)


def binary_classifier_forward(x, params, *, tile_b=512, use_bf16=True):
    """x: [B, input_size] float32. Returns sigmoid probabilities [B, 1] float32."""
    w1, b1, w2, b2, w3, b3 = params
    B, D = x.shape
    H1 = w1.shape[1]
    H2 = w2.shape[1]

    compute_dtype = jnp.bfloat16 if use_bf16 else jnp.float32

    # Batch tile: multiple of 16 (bf16 sublane packing), sized to amortize the
    # per-grid-step overhead and fill the MXU M dimension; tiny VMEM footprint
    # (~48 KiB resident weights + O(100 KiB) per x tile) fits all chips incl. v7x.
    assert tile_b % 16 == 0 and tile_b >= 16
    n_tiles = pl.cdiv(B, tile_b)
    Bp = n_tiles * tile_b
    if Bp != B:
        x = jnp.pad(x, ((0, Bp - B), (0, 0)))

    x_in = x.astype(compute_dtype)
    w1_in = w1.astype(compute_dtype)
    w2_in = w2.astype(compute_dtype)
    b1_in = b1.astype(jnp.float32)
    b2_in = b2.astype(jnp.float32)
    w3_row = w3.reshape(1, H2).astype(jnp.float32)  # used on the VPU, stays f32
    b3_in = b3.reshape(1, 1).astype(jnp.float32)

    resident = lambda i: (0, 0)  # constant index_map -> fetched once, stays in VMEM

    itemsize = jnp.dtype(compute_dtype).itemsize
    cost = pl.CostEstimate(
        flops=2 * Bp * (D * H1 + H1 * H2 + H2),
        bytes_accessed=(Bp * D * itemsize                 # x
                        + (D * H1 + H1 * H2) * itemsize   # w1, w2
                        + (H1 + H2 + H2 + 1) * 4          # biases + w3 row
                        + Bp * 4),                        # output
        transcendentals=Bp,                               # sigmoid
    )

    out = pl.pallas_call(
        _mlp_kernel,
        out_shape=jax.ShapeDtypeStruct((Bp, 1), jnp.float32),
        grid_spec=pltpu.PrefetchScalarGridSpec(
            num_scalar_prefetch=0,
            grid=(n_tiles,),
            in_specs=[
                pl.BlockSpec((tile_b, D), lambda i: (i, 0)),  # x tile
                pl.BlockSpec((D, H1), resident),              # w1
                pl.BlockSpec((1, H1), resident),              # b1
                pl.BlockSpec((H1, H2), resident),             # w2
                pl.BlockSpec((1, H2), resident),              # b2
                pl.BlockSpec((1, H2), resident),              # w3 (row)
                pl.BlockSpec((1, 1), resident),               # b3
            ],
            # TODO(synk): (tile_b, 1) output keeps masked vst stores; output bytes are
            # ~3% of x traffic so a lane-dense reshape/transpose isn't worth the XLU op.
            out_specs=pl.BlockSpec((tile_b, 1), lambda i: (i, 0)),
        ),
        compiler_params=pltpu.CompilerParams(
            dimension_semantics=("parallel",)),   # shards batch tiles across v7x TCs
        cost_estimate=cost,
    )(x_in, w1_in, b1_in, w2_in, b2_in, w3_row, b3_in)

    return out[:B]


def init_params(key, input_size):
    """Deterministic init mirroring torch.nn.Linear uniform(-1/sqrt(fan_in), 1/sqrt(fan_in))."""
    ks = jax.random.split(key, 6)

    def linear(kw, kb, fan_in, fan_out):
        bound = 1.0 / jnp.sqrt(jnp.float32(fan_in))
        w = jax.random.uniform(kw, (fan_in, fan_out), jnp.float32, -bound, bound)
        b = jax.random.uniform(kb, (1, fan_out), jnp.float32, -bound, bound)
        return w, b

    w1, b1 = linear(ks[0], ks[1], input_size, 256)
    w2, b2 = linear(ks[2], ks[3], 256, 64)
    w3, b3 = linear(ks[4], ks[5], 64, 1)
    return (w1, b1, w2, b2, w3, b3)


def reference_forward(x, params, *, use_bf16=True):
    """Pure-JAX reference with the same dtype path as the kernel."""
    w1, b1, w2, b2, w3, b3 = params
    cd = jnp.bfloat16 if use_bf16 else jnp.float32
    h1 = jnp.maximum(
        jnp.dot(x.astype(cd), w1.astype(cd), preferred_element_type=jnp.float32) + b1, 0.0)
    h2 = jnp.maximum(
        jnp.dot(h1.astype(cd), w2.astype(cd), preferred_element_type=jnp.float32) + b2, 0.0)
    logit = jnp.sum(h2 * w3.reshape(1, -1), axis=-1, keepdims=True) + b3.reshape(1, 1)
    return jax.nn.sigmoid(logit)


if __name__ == "__main__":
    key = jax.random.PRNGKey(0)
    k_x, k_p, k_x2 = jax.random.split(key, 3)

    input_size = 32
    batch = 8

    params = init_params(k_p, input_size)

    # Small-batch run (single tile, exercises padding path).
    x = jax.random.normal(k_x, (batch, input_size), jnp.float32)
    out = binary_classifier_forward(x, params)
    out = jax.block_until_ready(out)
    ref = reference_forward(x, params)
    assert out.shape == (batch, 1)
    assert jnp.allclose(out, ref, atol=2e-3, rtol=2e-3), float(jnp.max(jnp.abs(out - ref)))

    # Multi-tile run (non-multiple batch, exercises the batch grid / pipelining).
    x_big = jax.random.normal(k_x2, (1000, input_size), jnp.float32)
    out_big = jax.block_until_ready(binary_classifier_forward(x_big, params))
    ref_big = reference_forward(x_big, params)
    assert out_big.shape == (1000, 1)
    assert jnp.allclose(out_big, ref_big, atol=2e-3, rtol=2e-3), \
        float(jnp.max(jnp.abs(out_big - ref_big)))

    print("KERNEL_OK")
</pallas_src>

<mosaic_0001>
module attributes {stable_mosaic.version = 11 : i64} {
  func.func @_mlp_kernel(%arg0: i32, %arg1: memref<512x32xbf16, #tpu.memory_space<vmem>>, %arg2: memref<32x256xbf16, #tpu.memory_space<vmem>>, %arg3: memref<1x256xf32, #tpu.memory_space<vmem>>, %arg4: memref<256x64xbf16, #tpu.memory_space<vmem>>, %arg5: memref<1x64xf32, #tpu.memory_space<vmem>>, %arg6: memref<1x64xf32, #tpu.memory_space<vmem>>, %arg7: memref<1x1xf32, #tpu.memory_space<vmem>>, %arg8: memref<512x1xf32, #tpu.memory_space<vmem>>) attributes {dimension_semantics = [#tpu.dimension_semantics<parallel>], iteration_bounds = array<i64: 1>, scalar_prefetch = 0 : i64, scratch_operands = 0 : i64, tpu.core_type = #tpu.core_type<tc>, window_params = [{transform_indices = @transform_0, window_bounds = array<i64: 512, 32>}, {pipeline_mode = #tpu.pipeline_mode<synchronous>, transform_indices = @transform_1, window_bounds = array<i64: 32, 256>}, {pipeline_mode = #tpu.pipeline_mode<synchronous>, transform_indices = @transform_2, window_bounds = array<i64: 1, 256>}, {pipeline_mode = #tpu.pipeline_mode<synchronous>, transform_indices = @transform_3, window_bounds = array<i64: 256, 64>}, {pipeline_mode = #tpu.pipeline_mode<synchronous>, transform_indices = @transform_4, window_bounds = array<i64: 1, 64>}, {pipeline_mode = #tpu.pipeline_mode<synchronous>, transform_indices = @transform_5, window_bounds = array<i64: 1, 64>}, {pipeline_mode = #tpu.pipeline_mode<synchronous>, transform_indices = @transform_6, window_bounds = array<i64: 1, 1>}, {transform_indices = @transform_7, window_bounds = array<i64: 512, 1>}]} {
    %c0 = arith.constant 0 : index
    %c0_0 = arith.constant 0 : index
    %0 = vector.load %arg1[%c0, %c0_0] : memref<512x32xbf16, #tpu.memory_space<vmem>>, vector<512x32xbf16>
    %c0_1 = arith.constant 0 : index
    %c0_2 = arith.constant 0 : index
    %1 = vector.load %arg2[%c0_1, %c0_2] : memref<32x256xbf16, #tpu.memory_space<vmem>>, vector<32x256xbf16>
    %cst = arith.constant dense<0.000000e+00> : vector<512x256xf32>
    %2 = tpu.matmul %0, %1, %cst {dimension_numbers = #tpu.dot_dimension_numbers<[1], [0], [0], [1], [0, 0, 1, 1], [], []>} : vector<512x32xbf16>, vector<32x256xbf16>, vector<512x256xf32> -> vector<512x256xf32>
    %c0_3 = arith.constant 0 : index
    %c0_4 = arith.constant 0 : index
    %3 = vector.load %arg3[%c0_3, %c0_4] : memref<1x256xf32, #tpu.memory_space<vmem>>, vector<1x256xf32>
    %4 = vector.broadcast %3 : vector<1x256xf32> to vector<512x256xf32>
    %5 = arith.addf %2, %4 : vector<512x256xf32>
    %cst_5 = arith.constant 0.000000e+00 : f32
    %6 = vector.broadcast %cst_5 : f32 to vector<512x256xf32>
    %7 = arith.maximumf %5, %6 : vector<512x256xf32>
    %8 = arith.truncf %7 : vector<512x256xf32> to vector<512x256xbf16>
    %c0_6 = arith.constant 0 : index
    %c0_7 = arith.constant 0 : index
    %9 = vector.load %arg4[%c0_6, %c0_7] : memref<256x64xbf16, #tpu.memory_space<vmem>>, vector<256x64xbf16>
    %cst_8 = arith.constant dense<0.000000e+00> : vector<512x64xf32>
    %10 = tpu.matmul %8, %9, %cst_8 {dimension_numbers = #tpu.dot_dimension_numbers<[1], [0], [0], [1], [0, 0, 1, 1], [], []>} : vector<512x256xbf16>, vector<256x64xbf16>, vector<512x64xf32> -> vector<512x64xf32>
    %c0_9 = arith.constant 0 : index
    %c0_10 = arith.constant 0 : index
    %11 = vector.load %arg5[%c0_9, %c0_10] : memref<1x64xf32, #tpu.memory_space<vmem>>, vector<1x64xf32>
    %12 = vector.broadcast %11 : vector<1x64xf32> to vector<512x64xf32>
    %13 = arith.addf %10, %12 : vector<512x64xf32>
    %cst_11 = arith.constant 0.000000e+00 : f32
    %14 = vector.broadcast %cst_11 : f32 to vector<512x64xf32>
    %15 = arith.maximumf %13, %14 : vector<512x64xf32>
    %c0_12 = arith.constant 0 : index
    %c0_13 = arith.constant 0 : index
    %16 = vector.load %arg6[%c0_12, %c0_13] : memref<1x64xf32, #tpu.memory_space<vmem>>, vector<1x64xf32>
    %17 = vector.broadcast %16 : vector<1x64xf32> to vector<512x64xf32>
    %18 = arith.mulf %15, %17 : vector<512x64xf32>
    %cst_14 = arith.constant dense<0.000000e+00> : vector<512xf32>
    %19 = vector.multi_reduction <add>, %18, %cst_14 [1] : vector<512x64xf32> to vector<512xf32>
    %20 = vector.shape_cast %19 : vector<512xf32> to vector<512x1xf32>
    %c0_15 = arith.constant 0 : index
    %c0_16 = arith.constant 0 : index
    %21 = vector.load %arg7[%c0_15, %c0_16] : memref<1x1xf32, #tpu.memory_space<vmem>>, vector<1x1xf32>
    %22 = vector.broadcast %21 : vector<1x1xf32> to vector<512x1xf32>
    %23 = arith.addf %20, %22 : vector<512x1xf32>
    %24 = arith.negf %23 : vector<512x1xf32>
    %25 = math.exp %24 : vector<512x1xf32>
    %cst_17 = arith.constant 1.000000e+00 : f32
    %26 = vector.broadcast %cst_17 : f32 to vector<512x1xf32>
    %27 = arith.addf %26, %25 : vector<512x1xf32>
    %28 = arith.divf %26, %27 : vector<512x1xf32>
    %c0_18 = arith.constant 0 : index
    %c0_19 = arith.constant 0 : index
    %29 = vector.load %arg8[%c0_18, %c0_19] : memref<512x1xf32, #tpu.memory_space<vmem>>, vector<512x1xf32>
    tpu.vector_store %arg8[%c0_18, %c0_19], %28 {strides = array<i32>} : memref<512x1xf32, #tpu.memory_space<vmem>>, vector<512x1xf32>,
    return
  }
  func.func @transform_0(%arg0: i32) -> (i32, i32) {
    %c0_i32 = arith.constant 0 : i32
    %c0_i32_0 = arith.constant 0 : i32
    return %arg0, %c0_i32 : i32, i32
  }
  func.func @transform_1(%arg0: i32) -> (i32, i32) {
    %c0_i32 = arith.constant 0 : i32
    %c0_i32_0 = arith.constant 0 : i32
    %c0_i32_1 = arith.constant 0 : i32
    return %c0_i32, %c0_i32_0 : i32, i32
  }
  func.func @transform_2(%arg0: i32) -> (i32, i32) {
    %c0_i32 = arith.constant 0 : i32
    %c0_i32_0 = arith.constant 0 : i32
    %c0_i32_1 = arith.constant 0 : i32
    return %c0_i32, %c0_i32_0 : i32, i32
  }
  func.func @transform_3(%arg0: i32) -> (i32, i32) {
    %c0_i32 = arith.constant 0 : i32
    %c0_i32_0 = arith.constant 0 : i32
    %c0_i32_1 = arith.constant 0 : i32
    return %c0_i32, %c0_i32_0 : i32, i32
  }
  func.func @transform_4(%arg0: i32) -> (i32, i32) {
    %c0_i32 = arith.constant 0 : i32
    %c0_i32_0 = arith.constant 0 : i32
    %c0_i32_1 = arith.constant 0 : i32
    return %c0_i32, %c0_i32_0 : i32, i32
  }
  func.func @transform_5(%arg0: i32) -> (i32, i32) {
    %c0_i32 = arith.constant 0 : i32
    %c0_i32_0 = arith.constant 0 : i32
    %c0_i32_1 = arith.constant 0 : i32
    return %c0_i32, %c0_i32_0 : i32, i32
  }
  func.func @transform_6(%arg0: i32) -> (i32, i32) {
    %c0_i32 = arith.constant 0 : i32
    %c0_i32_0 = arith.constant 0 : i32
    %c0_i32_1 = arith.constant 0 : i32
    return %c0_i32, %c0_i32_0 : i32, i32
  }
  func.func @transform_7(%arg0: i32) -> (i32, i32) {
    %c0_i32 = arith.constant 0 : i32
    %c0_i32_0 = arith.constant 0 : i32
    return %arg0, %c0_i32 : i32, i32
  }
}

</mosaic_0001>

<bundles_post_ra>
// kernel: tpu_custom_call.1
= control target key start
LH: loop header
LB: loop body
LE: loop exit
PB: predicated region body
PF: predicated region fallthrough
CT: control target
= control target key end

     0   :  { %v2704_v1 = vmov 0   ;;  %vm289_vm0 = vcmask 261120   ;;  %v99_v56 = vlaneseq  ;;  %vm1490_vm1 = vcmask 523264   ;;  %s3707_s1 = inlined_call_operand.vmem [shape: bf16[32,256], index: 1, kind: input, shape index: {}]   ;;  %s3708_s0 = inlined_call_operand.vmem [shape: bf16[512,32], index: 0, kind: input, shape index: {}]   ;;  %s3709_s3 = inlined_call_operand.vmem [shape: bf16[256,64], index: 3, kind: input, shape index: {}]   ;;  %s3710_s2 = inlined_call_operand.vmem [shape: f32[1,256], index: 2, kind: input, shape index: {}]   ;;  %s3711_s4 = inlined_call_operand.vmem [shape: f32[1,64], index: 4, kind: input, shape index: {}]   ;;  %s3712_s5 = inlined_call_operand.vmem [shape: f32[1,64], index: 5, kind: input, shape index: {}]   ;;  %s3713_s6 = inlined_call_operand.<no memory space> [shape: f32[1,1], index: 6, kind: input, shape index: {}]   ;;  %s3714_s7 = inlined_call_operand.vmem [shape: f32[512,1], index: 7, kind: output, shape index: {}]  }
   0x1   :  { %v2391_v0 = vld [vmem:[%s3707_s1 + $0x14] ss:$8 sps:$4 sm:$0xff]   ;;  %418 = vmatprep.mubr.bf16.mxu0 %v2704_v1  ;;  %2358 = vmatprep.subr.bf16.mxu1 %v2704_v1  ;;  %v2393_v2 = vld [vmem:[%s3707_s1 + $0x10] ss:$8 sps:$4 sm:$0xff]   ;;  %v2394_v3 = vld [vmem:[%s3707_s1 + $0x4] ss:$8 sps:$4 sm:$0xff]  }
   0x2   :  { %398 = vmatprep.subr.bf16.mxu0 %v2391_v0  ;;  %v2396_v4 = vld [vmem:[%s3707_s1] ss:$8 sps:$4 sm:$0xff]   ;;  %v2408_v7 = vld [vmem:[%s3709_s3 + $0x38] sm:$0xff]   ;;  %v2411_v8 = vld [vmem:[%s3709_s3 + $0x30] sm:$0xff]   ;;  %v100_v59 = vshrl.u32 %v99_v56, 7  ;;  %vm2138_vm2 = vcmask 7168  }
   0x3   :  { %399 = vmatpush1.bf16.msra.mxu0 %v2393_v2  ;;  %v2397_v5 = vld [vmem:[%s3708_s0] sm:$0xff]   ;;  %v2398_v6 = vld [vmem:[%s3708_s0 + $0x8] sm:$0xff]   ;;  %2374 = vmatpush1.bf16.msra.mxu1 %v2408_v7  ;;  %v2399_v10 = vld [vmem:[%s3708_s0 + $0x10] sm:$0xff]  }
   0x4   :  { %400 = vmatprep.subr.bf16.mxu0 %v2394_v3  ;;  %2359 = vmatprep.subr.bf16.mxu1 %v2704_v1  ;;  %v2414_v9 = vld [vmem:[%s3709_s3 + $0x28] sm:$0xff]   ;;  %v2417_v11 = vld [vmem:[%s3709_s3 + $0x20] sm:$0xff]   ;;  %v2420_v12 = vld [vmem:[%s3709_s3 + $0x18] sm:$0xff]   ;;  %v101_v63 = vsub.s32 0, %v100_v59  ;;  %v105_v0 = vsub.s32 1, %v100_v59 }
   0x5   :  { %v2400_v13 = vld [vmem:[%s3708_s0 + $0x18] sm:$0xff]   ;;  %v2401_v14 = vld [vmem:[%s3708_s0 + $0x20] sm:$0xff]   ;;  %v2423_v15 = vld [vmem:[%s3709_s3 + $0x10] sm:$0xff]  }
   0x6   :  { %v2402_v16 = vld [vmem:[%s3708_s0 + $0x28] sm:$0xff]   ;;  %v2403_v17 = vld [vmem:[%s3708_s0 + $0x30] sm:$0xff]   ;;  %v2404_v19 = vld [vmem:[%s3708_s0 + $0x38] sm:$0xff]  }
   0x7   :  { %401 = vmatpush1.bf16.msra.mxu0 %v2396_v4  ;;  %2375 = vmatpush1.bf16.msra.mxu1 %v2411_v8  ;;  %v2426_v18 = vld [vmem:[%s3709_s3 + $0x8] sm:$0xff]   ;;  %v2405_v20 = vld [vmem:[%s3708_s0 + $0x40] sm:$0xff]   ;;  %v2430_v23 = vld [vmem:[%s3709_s3 + $0x78] sm:$0xff]  }
   0x8   :  { %1066 = vmatprep.subr.bf16.mxu0 %v2704_v1  ;;  %2360 = vmatprep.subr.bf16.mxu1 %v2704_v1  ;;  %v2429_v21 = vld [vmem:[%s3709_s3] sm:$0xff]   ;;  %v2406_v22 = vld [vmem:[%s3708_s0 + $0x48] sm:$0xff]   ;;  %v2432_v24 = vld [vmem:[%s3709_s3 + $0x70] sm:$0xff]  }
   0x9   :  { %v2407_v25 = vld [vmem:[%s3708_s0 + $0x50] sm:$0xff]   ;;  %v2433_v26 = vld [vmem:[%s3709_s3 + $0x68] sm:$0xff]   ;;  %v2435_v27 = vld [vmem:[%s3709_s3 + $0x60] sm:$0xff]  }
   0xa   :  { %2243 = vmatmul.mubr.msk.bf16.vlgmr.msra.gmra.mxu0 %vm289_vm0, %v2397_v5  ;;  %v2409_v28 = vld [vmem:[%s3708_s0 + $0x58] sm:$0xff]   ;;  %v2438_v30 = vld [vmem:[%s3709_s3 + $0x50] sm:$0xff]   ;;  %v2410_v31 = vld [vmem:[%s3708_s0 + $0x60] sm:$0xff]  }
   0xb   :  { %428 = vmatprep.mubr.bf16.mxu0 %v2704_v1  ;;  %1067 = vmatpush1.bf16.msra.mxu0 %v2408_v7  ;;  %v2436_v29 = vld [vmem:[%s3709_s3 + $0x58] sm:$0xff]   ;;  %v2439_v32 = vld [vmem:[%s3709_s3 + $0x48] sm:$0xff]   ;;  %v2441_v33 = vld [vmem:[%s3709_s3 + $0x40] sm:$0xff]  }
   0xc   :  { %1068 = vmatprep.subr.bf16.mxu0 %v2704_v1  ;;  %2376 = vmatpush1.bf16.msra.mxu1 %v2414_v9  ;;  %v2412_v34 = vld [vmem:[%s3708_s0 + $0x68] sm:$0xff]   ;;  %v2413_v35 = vld [vmem:[%s3708_s0 + $0x70] sm:$0xff]   ;;  %v2415_v36 = vld [vmem:[%s3708_s0 + $0x78] sm:$0xff]  }
   0xd   :  { %2361 = vmatprep.subr.bf16.mxu1 %v2704_v1  ;;  %v2416_v37 = vld [vmem:[%s3708_s0 + $0x80] sm:$0xff]   ;;  %v2418_v38 = vld [vmem:[%s3708_s0 + $0x88] sm:$0xff]   ;;  %v2419_v39 = vld [vmem:[%s3708_s0 + $0x90] sm:$0xff]  }
   0xe   :  { %v2421_v40 = vld [vmem:[%s3708_s0 + $0x98] sm:$0xff]   ;;  %v2422_v41 = vld [vmem:[%s3708_s0 + $0xa0] sm:$0xff]   ;;  %v2424_v42 = vld [vmem:[%s3708_s0 + $0xa8] sm:$0xff]  }
   0xf   :  { %1069 = vmatpush1.bf16.msra.mxu0 %v2411_v8  ;;  %v2425_v43 = vld [vmem:[%s3708_s0 + $0xb0] sm:$0xff]   ;;  %v2427_v44 = vld [vmem:[%s3708_s0 + $0xb8] sm:$0xff]   ;;  %v2428_v45 = vld [vmem:[%s3708_s0 + $0xc0] sm:$0xff]  }
  0x10   :  { %1070 = vmatprep.subr.bf16.mxu0 %v2704_v1  ;;  %2377 = vmatpush1.bf16.msra.mxu1 %v2417_v11  ;;  %v2431_v49 = vld [vmem:[%s3708_s0 + $0xc8] sm:$0xff]   ;;  %v2434_v54 = vld [vmem:[%s3708_s0 + $0xd0] sm:$0xff]   ;;  %v2437_v61 = vld [vmem:[%s3708_s0 + $0xd8] sm:$0xff]  }
  0x11   :  { %2362 = vmatprep.subr.bf16.mxu1 %v2704_v1  ;;  %v97_v2 = vld [vmem:[%s3710_s2] sm:$0x3] }
  0x12   :  { %2244 = vmatmul.mubr.msk.bf16.gmra.mxu0 %vm289_vm0, %v2398_v6  ;;  %v3005_v5 = vrot.slane %v97_v2, %v101_v63  ;;  %v3007_v6 = vrot.slane %v97_v2, %v105_v0  ;;  %v2440_v8 = vld [vmem:[%s3708_s0 + $0xe0] sm:$0xff]  }
  0x13   :  { %438 = vmatprep.mubr.bf16.mxu0 %v2704_v1  ;;  %1071 = vmatpush1.bf16.msra.mxu0 %v2414_v9 }
  0x14   :  { %1072 = vmatprep.subr.bf16.mxu0 %v2704_v1  ;;  %2378 = vmatpush1.bf16.msra.mxu1 %v2420_v12 }
  0x15   :  { %2363 = vmatprep.subr.bf16.mxu1 %v2704_v1 }
  0x17   :  { %1073 = vmatpush1.bf16.msra.mxu0 %v2417_v11 }
  0x18   :  { %1074 = vmatprep.subr.bf16.mxu0 %v2704_v1  ;;  %2379 = vmatpush1.bf16.msra.mxu1 %v2423_v15 }
  0x19   :  { %2364 = vmatprep.subr.bf16.mxu1 %v2704_v1 }
  0x1a   :  { %2245 = vmatmul.mubr.msk.bf16.gmra.mxu0 %vm289_vm0, %v2399_v10 }
  0x1b   :  { %448 = vmatprep.mubr.bf16.mxu0 %v2704_v1  ;;  %1075 = vmatpush1.bf16.msra.mxu0 %v2420_v12 }
  0x1c   :  { %1076 = vmatprep.subr.bf16.mxu0 %v2704_v1  ;;  %2380 = vmatpush1.bf16.msra.mxu1 %v2426_v18 }
  0x1d   :  { %2365 = vmatprep.subr.bf16.mxu1 %v2704_v1 }
  0x1f   :  { %1077 = vmatpush1.bf16.msra.mxu0 %v2423_v15 }
  0x20   :  { %1078 = vmatprep.subr.bf16.mxu0 %v2704_v1  ;;  %2381 = vmatpush1.bf16.msra.mxu1 %v2429_v21 }
  0x21   :  { %2366 = vmatprep.subr.bf16.mxu1 %v2704_v1 }
  0x22   :  { %2246 = vmatmul.mubr.msk.bf16.gmra.mxu0 %vm289_vm0, %v2400_v13 }
  0x23   :  { %458 = vmatprep.mubr.bf16.mxu0 %v2704_v1  ;;  %1079 = vmatpush1.bf16.msra.mxu0 %v2426_v18 }
  0x24   :  { %1080 = vmatprep.subr.bf16.mxu0 %v2704_v1  ;;  %2382 = vmatpush2.bf16.msra.mxu1 %v2430_v23 }
  0x25   :  { %2367 = vmatprep.subr.bf16.mxu1 %v2704_v1 }
  0x27   :  { %1081 = vmatpush1.bf16.msra.mxu0 %v2429_v21 }
  0x28   :  { %1082 = vmatprep.subr.bf16.mxu0 %v2704_v1  ;;  %2383 = vmatpush2.bf16.msra.mxu1 %v2432_v24 }
  0x29   :  { %2368 = vmatprep.subr.bf16.mxu1 %v2704_v1 }
  0x2a   :  { %2247 = vmatmul.mubr.msk.bf16.gmra.mxu0 %vm289_vm0, %v2401_v14 }
  0x2b   :  { %468 = vmatprep.mubr.bf16.mxu0 %v2704_v1  ;;  %1083 = vmatpush2.bf16.msra.mxu0 %v2430_v23  ;;  %v2442_v23 = vld [vmem:[%s3708_s0 + $0xe8] sm:$0xff]  }
  0x2c   :  { %1084 = vmatprep.subr.bf16.mxu0 %v2704_v1  ;;  %2384 = vmatpush2.bf16.msra.mxu1 %v2433_v26 }
  0x2d   :  { %2369 = vmatprep.subr.bf16.mxu1 %v2704_v1 }
  0x2f   :  { %1085 = vmatpush2.bf16.msra.mxu0 %v2432_v24 }
  0x30   :  { %1086 = vmatprep.subr.bf16.mxu0 %v2704_v1  ;;  %2385 = vmatpush2.bf16.msra.mxu1 %v2435_v27 }
  0x31   :  { %2370 = vmatprep.subr.bf16.mxu1 %v2704_v1 }
  0x32   :  { %2248 = vmatmul.mubr.msk.bf16.gmra.mxu0 %vm289_vm0, %v2402_v16 }
  0x33   :  { %478 = vmatprep.mubr.bf16.mxu0 %v2704_v1  ;;  %1087 = vmatpush2.bf16.msra.mxu0 %v2433_v26 }
  0x34   :  { %1088 = vmatprep.subr.bf16.mxu0 %v2704_v1  ;;  %2386 = vmatpush2.bf16.msra.mxu1 %v2436_v29 }
  0x35   :  { %2371 = vmatprep.subr.bf16.mxu1 %v2704_v1 }
  0x37   :  { %1089 = vmatpush2.bf16.msra.mxu0 %v2435_v27 }
  0x38   :  { %1090 = vmatprep.subr.bf16.mxu0 %v2704_v1  ;;  %2387 = vmatpush2.bf16.msra.mxu1 %v2438_v30 }
  0x39   :  { %2372 = vmatprep.subr.bf16.mxu1 %v2704_v1 }
  0x3a   :  { %2249 = vmatmul.mubr.msk.bf16.gmra.mxu0 %vm289_vm0, %v2403_v17 }
  0x3b   :  { %488 = vmatprep.mubr.bf16.mxu0 %v2704_v1  ;;  %1091 = vmatpush2.bf16.msra.mxu0 %v2436_v29 }
  0x3c   :  { %1092 = vmatprep.subr.bf16.mxu0 %v2704_v1  ;;  %2388 = vmatpush2.bf16.msra.mxu1 %v2439_v32 }
  0x3d   :  { %2373 = vmatprep.subr.bf16.mxu1 %v2704_v1 }
  0x3f   :  { %1093 = vmatpush2.bf16.msra.mxu0 %v2438_v30 }
  0x40   :  { %1094 = vmatprep.subr.bf16.mxu0 %v2704_v1  ;;  %2389 = vmatpush2.bf16.msra.mxu1 %v2441_v33 }
  0x42   :  { %2250 = vmatmul.mubr.msk.bf16.gmra.mxu0 %vm289_vm0, %v2404_v19 }
  0x43   :  { %498 = vmatprep.mubr.bf16.mxu0 %v2704_v1  ;;  %1095 = vmatpush2.bf16.msra.mxu0 %v2439_v32 }
  0x44   :  { %1096 = vmatprep.subr.bf16.mxu0 %v2704_v1 }
  0x47   :  { %1097 = vmatpush2.bf16.msra.mxu0 %v2441_v33 }
  0x4a   :  { %2251 = vmatmul.mubr.msk.bf16.gmra.mxu0 %vm289_vm0, %v2405_v20 }
  0x4b   :  { %508 = vmatprep.mubr.bf16.mxu0 %v2704_v1 }
  0x52   :  { %2252 = vmatmul.mubr.msk.bf16.gmra.mxu0 %vm289_vm0, %v2406_v22 }
  0x53   :  { %518 = vmatprep.mubr.bf16.mxu0 %v2704_v1 }
  0x5a   :  { %2253 = vmatmul.mubr.msk.bf16.gmra.mxu0 %vm289_vm0, %v2407_v25 }
  0x5b   :  { %528 = vmatprep.mubr.bf16.mxu0 %v2704_v1 }
  0x62   :  { %2254 = vmatmul.mubr.msk.bf16.gmra.mxu0 %vm289_vm0, %v2409_v28 }
  0x63   :  { %538 = vmatprep.mubr.bf16.mxu0 %v2704_v1 }
  0x6a   :  { %2255 = vmatmul.mubr.msk.bf16.gmra.mxu0 %vm289_vm0, %v2410_v31 }
  0x6b   :  { %548 = vmatprep.mubr.bf16.mxu0 %v2704_v1 }
  0x72   :  { %2256 = vmatmul.mubr.msk.bf16.gmra.mxu0 %vm289_vm0, %v2412_v34 }
  0x73   :  { %558 = vmatprep.mubr.bf16.mxu0 %v2704_v1 }
  0x7a   :  { %2257 = vmatmul.mubr.msk.bf16.gmra.mxu0 %vm289_vm0, %v2413_v35 }
  0x7b   :  { %568 = vmatprep.mubr.bf16.mxu0 %v2704_v1 }
  0x82   :  { %2258 = vmatmul.mubr.msk.bf16.gmra.mxu0 %vm289_vm0, %v2415_v36 }
  0x83   :  { %578 = vmatprep.mubr.bf16.mxu0 %v2704_v1 }
  0x8a   :  { %2259 = vmatmul.mubr.msk.bf16.gmra.mxu0 %vm289_vm0, %v2416_v37 }
  0x8b   :  { %588 = vmatprep.mubr.bf16.mxu0 %v2704_v1 }
  0x92   :  { %2260 = vmatmul.mubr.msk.bf16.gmra.mxu0 %vm289_vm0, %v2418_v38  ;;  %v2443_v38 = vld [vmem:[%s3708_s0 + $0xf0] sm:$0xff]  }
  0x93   :  { %598 = vmatprep.mubr.bf16.mxu0 %v2704_v1 }
  0x9a   :  { %2261 = vmatmul.mubr.msk.bf16.gmra.mxu0 %vm289_vm0, %v2419_v39 }
  0x9b   :  { %608 = vmatprep.mubr.bf16.mxu0 %v2704_v1 }
  0xa2   :  { %2262 = vmatmul.mubr.msk.bf16.gmra.mxu0 %vm289_vm0, %v2421_v40 }
  0xa3   :  { %618 = vmatprep.mubr.bf16.mxu0 %v2704_v1 }
  0xaa   :  { %2263 = vmatmul.mubr.msk.bf16.gmra.mxu0 %vm289_vm0, %v2422_v41 }
  0xab   :  { %628 = vmatprep.mubr.bf16.mxu0 %v2704_v1 }
  0xb2   :  { %2264 = vmatmul.mubr.msk.bf16.gmra.mxu0 %vm289_vm0, %v2424_v42 }
  0xb3   :  { %638 = vmatprep.mubr.bf16.mxu0 %v2704_v1 }
  0xba   :  { %2265 = vmatmul.mubr.msk.bf16.gmra.mxu0 %vm289_vm0, %v2425_v43 }
  0xbb   :  { %648 = vmatprep.mubr.bf16.mxu0 %v2704_v1 }
  0xc2   :  { %2266 = vmatmul.mubr.msk.bf16.gmra.mxu0 %vm289_vm0, %v2427_v44 }
  0xc3   :  { %658 = vmatprep.mubr.bf16.mxu0 %v2704_v1 }
  0xca   :  { %v2961_v46 = vpop.f32.mrf.mxu0  ;;  %2267 = vmatmul.mubr.msk.bf16.gmra.mxu0 %vm289_vm0, %v2428_v45 }
  0xcb   :  { %668 = vmatprep.mubr.bf16.mxu0 %v2704_v1 }
  0xcc   :  { %v2965_v47 = vpop.f32.mrf.mxu0 }
  0xce   :  { %v2967_v48 = vpop.f32.mrf.mxu0 }
  0xd0   :  { %v2972_v50 = vpop.f32.mrf.mxu0 }
  0xd1   :  { %v427_v43 = vadd.f32 %v2972_v50, %v3007_v6  ;;  %v2444_v50 = vld [vmem:[%s3708_s0 + $0xf8] sm:$0xff]  }
  0xd2   :  { %v2974_v51 = vpop.f32.mrf.mxu0  ;;  %2268 = vmatmul.mubr.msk.bf16.gmra.mxu0 %vm289_vm0, %v2431_v49 }
  0xd3   :  { %678 = vmatprep.mubr.bf16.mxu0 %v2704_v1  ;;  %v742_v0 = vmax.f32 %v427_v43, 0.0 }
  0xd4   :  { %v2978_v52 = vpop.f32.mrf.mxu0 }
  0xd6   :  { %v2980_v53 = vpop.f32.mrf.mxu0 }
  0xd8   :  { %v2985_v55 = vpop.f32.mrf.mxu0 }
  0xda   :  { %v2987_v57 = vpop.f32.mrf.mxu0  ;;  %2269 = vmatmul.mubr.msk.bf16.gmra.mxu0 %vm289_vm0, %v2434_v54  ;;  %v423_v54 = vadd.f32 %v2965_v47, %v3007_v6  ;;  %v425_v47 = vadd.f32 %v2967_v48, %v3005_v5  ;;  %v433_v48 = vadd.f32 %v2978_v52, %v3007_v6  ;;  %v435_v52 = vadd.f32 %v2980_v53, %v3005_v5 }
  0xdb   :  { %688 = vmatprep.mubr.bf16.mxu0 %v2704_v1 }
  0xdc   :  { %v2991_v58 = vpop.f32.mrf.mxu0 }
  0xde   :  { %v2993_v60 = vpop.f32.mrf.mxu0 }
  0xe0   :  { %v2998_v62 = vpop.f32.mrf.mxu0 }
  0xe2   :  { %v450_v3 = vpop.f32.mrf.mxu0  ;;  %2270 = vmatmul.mubr.msk.bf16.gmra.mxu0 %vm289_vm0, %v2437_v61 }
  0xe3   :  { %698 = vmatprep.mubr.bf16.mxu0 %v2704_v1  ;;  %v451_v11 = vadd.f32 %v450_v3, %v3005_v5 }
  0xe4   :  { %v452_v4 = vpop.f32.mrf.mxu0 }
  0xe5   :  { %v453_v9 = vadd.f32 %v452_v4, %v3007_v6  ;;  %v751_v18 = vmax.f32 %v451_v11, 0.0  ;;  %v437_v11 = vadd.f32 %v2985_v55, %v3007_v6 }
  0xe6   :  { %v454_v7 = vpop.f32.mrf.mxu0 }
  0xe7   :  { %v455_v10 = vadd.f32 %v454_v7, %v3005_v5  ;;  %v752_v16 = vmax.f32 %v453_v9, 0.0  ;;  %v740_v7 = vmax.f32 %v423_v54, 0.0  ;;  %v746_v55 = vmax.f32 %v437_v11, 0.0 }
  0xe8   :  { %v456_v12 = vpop.f32.mrf.mxu0 }
  0xe9   :  { %v457_v13 = vadd.f32 %v456_v12, %v3007_v6  ;;  %v753_v14 = vmax.f32 %v455_v10, 0.0 }
  0xea   :  { %v460_v15 = vpop.f32.mrf.mxu0  ;;  %2271 = vmatmul.mubr.msk.bf16.gmra.mxu0 %vm289_vm0, %v2440_v8 }
  0xeb   :  { %v754_v17 = vmax.f32 %v457_v13, 0.0  ;;  %708 = vmatprep.mubr.bf16.mxu0 %v2704_v1  ;;  %v873_v21 = vpack.c.bf16 %v753_v14, %v751_v18  ;;  %v461_v26 = vadd.f32 %v460_v15, %v3005_v5  ;;  %v868_v13 = vpack.c.bf16 %v742_v0, %v740_v7 }
  0xec   :  { %v462_v19 = vpop.f32.mrf.mxu0  ;;  %v421_v14 = vadd.f32 %v2961_v46, %v3005_v5 }
  0xed   :  { %v874_v20 = vpack.c.bf16 %v754_v17, %v752_v16  ;;  %v463_v24 = vadd.f32 %v462_v19, %v3007_v6  ;;  %v755_v33 = vmax.f32 %v461_v26, 0.0  ;;  %v741_v19 = vmax.f32 %v425_v47, 0.0 }
  0xee   :  { %v464_v22 = vpop.f32.mrf.mxu0  ;;  %v744_v26 = vmax.f32 %v433_v48, 0.0 }
  0xef   :  { %v465_v25 = vadd.f32 %v464_v22, %v3005_v5  ;;  %1122 = vmatprep.mubr.bf16.mxu1 %v874_v20  ;;  %v756_v31 = vmax.f32 %v463_v24, 0.0 }
  0xf0   :  { %v466_v27 = vpop.f32.mrf.mxu0  ;;  %1123 = vmatmul.mubr.bf16.vlgmr.msra.gmra.mxu1 %v873_v21 }
  0xf1   :  { %v467_v28 = vadd.f32 %v466_v27, %v3007_v6  ;;  %v757_v29 = vmax.f32 %v465_v25, 0.0 }
  0xf2   :  { %v470_v30 = vpop.f32.mrf.mxu0  ;;  %2272 = vmatmul.mubr.msk.bf16.gmra.mxu0 %vm289_vm0, %v2442_v23  ;;  %v739_v23 = vmax.f32 %v421_v14, 0.0 }
  0xf3   :  { %v758_v32 = vmax.f32 %v467_v28, 0.0  ;;  %718 = vmatprep.mubr.bf16.mxu0 %v2704_v1  ;;  %v875_v36 = vpack.c.bf16 %v757_v29, %v755_v33  ;;  %v471_v41 = vadd.f32 %v470_v30, %v3005_v5  ;;  %v870_v33 = vpack.c.bf16 %v746_v55, %v744_v26 }
  0xf4   :  { %v472_v34 = vpop.f32.mrf.mxu0  ;;  %v867_v28 = vpack.c.bf16 %v741_v19, %v739_v23 }
  0xf5   :  { %v876_v35 = vpack.c.bf16 %v758_v32, %v756_v31  ;;  %v473_v39 = vadd.f32 %v472_v34, %v3007_v6  ;;  %v759_v61 = vmax.f32 %v471_v41, 0.0  ;;  %v447_v31 = vadd.f32 %v2998_v62, %v3007_v6 }
  0xf6   :  { %v474_v37 = vpop.f32.mrf.mxu0  ;;  %v431_v34 = vadd.f32 %v2974_v51, %v3005_v5 }
  0xf7   :  { %v475_v40 = vadd.f32 %v474_v37, %v3005_v5  ;;  %1130 = vmatprep.mubr.bf16.mxu1 %v876_v35  ;;  %v760_v56 = vmax.f32 %v473_v39, 0.0  ;;  %v443_v37 = vadd.f32 %v2991_v58, %v3007_v6  ;;  %v745_v39 = vmax.f32 %v435_v52, 0.0 }
  0xf8   :  { %v476_v42 = vpop.f32.mrf.mxu0  ;;  %1131 = vmatmul.mubr.bf16.gmra.mxu1 %v875_v36  ;;  %v743_v43 = vmax.f32 %v431_v34, 0.0  ;;  %v445_v58 = vadd.f32 %v2993_v60, %v3005_v5 }
  0xf9   :  { %v477_v44 = vadd.f32 %v476_v42, %v3007_v6  ;;  %v761_v45 = vmax.f32 %v475_v40, 0.0  ;;  %v750_v42 = vmax.f32 %v447_v31, 0.0 }
  0xfa   :  { %v480_v49 = vpop.f32.mrf.mxu0  ;;  %2273 = vmatmul.mubr.msk.bf16.gmra.mxu0 %vm289_vm0, %v2443_v38 }
  0xfb   :  { %v762_v59 = vmax.f32 %v477_v44, 0.0  ;;  %728 = vmatprep.mubr.bf16.mxu0 %v2704_v1  ;;  %v877_v3 = vpack.c.bf16 %v761_v45, %v759_v61  ;;  %v481_v1 = vadd.f32 %v480_v49, %v3005_v5  ;;  %v748_v49 = vmax.f32 %v443_v37, 0.0 }
  0xfc   :  { %v482_v63 = vpop.f32.mrf.mxu0 }
  0xfd   :  { %v878_v2 = vpack.c.bf16 %v762_v59, %v760_v56  ;;  %v483_v8 = vadd.f32 %v482_v63, %v3007_v6  ;;  %v763_v20 = vmax.f32 %v481_v1, 0.0  ;;  %v869_v56 = vpack.c.bf16 %v745_v39, %v743_v43 }
  0xfe   :  { %v484_v4 = vpop.f32.mrf.mxu0  ;;  %v872_v0 = vpack.c.bf16 %v750_v42, %v748_v49 }
  0xff   :  { %v485_v9 = vadd.f32 %v484_v4, %v3005_v5  ;;  %1138 = vmatprep.mubr.bf16.mxu1 %v878_v2  ;;  %v764_v17 = vmax.f32 %v483_v8, 0.0  ;;  %v441_v2 = vadd.f32 %v2987_v57, %v3005_v5  ;;  %v749_v8 = vmax.f32 %v445_v58, 0.0 }
 0x100   :  { %v486_v10 = vpop.f32.mrf.mxu0  ;;  %1139 = vmatmul.mubr.bf16.gmra.mxu1 %v877_v3 }
 0x101   :  { %v487_v12 = vadd.f32 %v486_v10, %v3007_v6  ;;  %v765_v15 = vmax.f32 %v485_v9, 0.0  ;;  %v747_v1 = vmax.f32 %v441_v2, 0.0 }
 0x102   :  { %v490_v16 = vpop.f32.mrf.mxu0  ;;  %2274 = vmatmul.mubr.msk.bf16.gmra.mxu0 %vm289_vm0, %v2444_v50 }
 0x103   :  { %v766_v18 = vmax.f32 %v487_v12, 0.0  ;;  %1098 = vmatprep.mubr.bf16.mxu0 %v868_v13  ;;  %v879_v24 = vpack.c.bf16 %v765_v15, %v763_v20  ;;  %v491_v29 = vadd.f32 %v490_v16, %v3005_v5  ;;  %v871_v14 = vpack.c.bf16 %v749_v8, %v747_v1 }
 0x104   :  { %v492_v21 = vpop.f32.mrf.mxu0 }
 0x105   :  { %v880_v22 = vpack.c.bf16 %v766_v18, %v764_v17  ;;  %v493_v46 = vadd.f32 %v492_v21, %v3007_v6  ;;  %v767_v40 = vmax.f32 %v491_v29, 0.0 }
 0x106   :  { %v494_v25 = vpop.f32.mrf.mxu0 }
 0x107   :  { %v495_v27 = vadd.f32 %v494_v25, %v3005_v5  ;;  %1146 = vmatprep.mubr.bf16.mxu1 %v880_v22  ;;  %v768_v53 = vmax.f32 %v493_v46, 0.0 }
 0x108   :  { %v496_v30 = vpop.f32.mrf.mxu0  ;;  %1147 = vmatmul.mubr.bf16.gmra.mxu1 %v879_v24 }
 0x109   :  { %v497_v32 = vadd.f32 %v496_v30, %v3007_v6  ;;  %v769_v35 = vmax.f32 %v495_v27, 0.0 }
 0x10a   :  { %v500_v36 = vpop.f32.mrf.mxu0  ;;  %1099 = vmatmul.mubr.bf16.vlgmr.msra.gmra.mxu0 %v867_v28 }
 0x10b   :  { %v770_v38 = vmax.f32 %v497_v32, 0.0  ;;  %1106 = vmatprep.mubr.bf16.mxu0 %v870_v33  ;;  %v881_v44 = vpack.c.bf16 %v769_v35, %v767_v40  ;;  %v501_v59 = vadd.f32 %v500_v36, %v3005_v5 }
 0x10c   :  { %v502_v41 = vpop.f32.mrf.mxu0 }
 0x10d   :  { %v882_v62 = vpack.c.bf16 %v770_v38, %v768_v53  ;;  %v503_v51 = vadd.f32 %v502_v41, %v3007_v6  ;;  %v771_v9 = vmax.f32 %v501_v59, 0.0 }
 0x10e   :  { %v504_v45 = vpop.f32.mrf.mxu0 }
 0x10f   :  { %v505_v54 = vadd.f32 %v504_v45, %v3005_v5  ;;  %1154 = vmatprep.mubr.bf16.mxu1 %v882_v62  ;;  %v772_v50 = vmax.f32 %v503_v51, 0.0 }
 0x110   :  { %v506_v61 = vpop.f32.mrf.mxu0  ;;  %1155 = vmatmul.mubr.bf16.gmra.mxu1 %v881_v44 }
 0x111   :  { %v507_v63 = vadd.f32 %v506_v61, %v3007_v6  ;;  %v773_v3 = vmax.f32 %v505_v54, 0.0 }
 0x112   :  { %v510_v4 = vpop.f32.mrf.mxu0  ;;  %1107 = vmatmul.mubr.bf16.gmra.mxu0 %v869_v56 }
 0x113   :  { %v774_v7 = vmax.f32 %v507_v63, 0.0  ;;  %1114 = vmatprep.mubr.bf16.mxu0 %v872_v0  ;;  %v883_v10 = vpack.c.bf16 %v773_v3, %v771_v9  ;;  %v511_v57 = vadd.f32 %v510_v4, %v3005_v5 }
 0x114   :  { %v512_v47 = vpop.f32.mrf.mxu0 }
 0x115   :  { %v884_v60 = vpack.c.bf16 %v774_v7, %v772_v50  ;;  %v513_v12 = vadd.f32 %v512_v47, %v3007_v6  ;;  %v775_v20 = vmax.f32 %v511_v57, 0.0 }
 0x116   :  { %v514_v11 = vpop.f32.mrf.mxu0 }
 0x117   :  { %v515_v13 = vadd.f32 %v514_v11, %v3005_v5  ;;  %1162 = vmatprep.mubr.bf16.mxu1 %v884_v60  ;;  %v776_v18 = vmax.f32 %v513_v12, 0.0 }
 0x118   :  { %v516_v15 = vpop.f32.mrf.mxu0  ;;  %1163 = vmatmul.mubr.bf16.gmra.mxu1 %v883_v10 }
 0x119   :  { %v517_v16 = vadd.f32 %v516_v15, %v3007_v6  ;;  %v777_v48 = vmax.f32 %v515_v13, 0.0 }
 0x11a   :  { %v520_v17 = vpop.f32.mrf.mxu0  ;;  %1115 = vmatmul.mubr.bf16.gmra.mxu0 %v871_v14 }
 0x11b   :  { %v778_v19 = vmax.f32 %v517_v16, 0.0  ;;  %v885_v22 = vpack.c.bf16 %v777_v48, %v775_v20  ;;  %v521_v26 = vadd.f32 %v520_v17, %v3005_v5 }
 0x11c   :  { %v522_v21 = vpop.f32.mrf.mxu0 }
 0x11d   :  { %v886_v55 = vpack.c.bf16 %v778_v19, %v776_v18  ;;  %v523_v24 = vadd.f32 %v522_v21, %v3007_v6  ;;  %v779_v31 = vmax.f32 %v521_v26, 0.0 }
 0x11e   :  { %v524_v23 = vpop.f32.mrf.mxu0 }
 0x11f   :  { %v525_v25 = vadd.f32 %v524_v23, %v3005_v5  ;;  %1170 = vmatprep.mubr.bf16.mxu1 %v886_v55  ;;  %v780_v29 = vmax.f32 %v523_v24, 0.0 }
 0x120   :  { %v526_v46 = vpop.f32.mrf.mxu0  ;;  %1171 = vmatmul.mubr.bf16.gmra.mxu1 %v885_v22 }
 0x121   :  { %v527_v27 = vadd.f32 %v526_v46, %v3007_v6  ;;  %v781_v28 = vmax.f32 %v525_v25, 0.0 }
 0x122   :  { %v530_v52 = vpop.f32.mrf.mxu0 }
 0x123   :  { %v782_v30 = vmax.f32 %v527_v27, 0.0  ;;  %v887_v34 = vpack.c.bf16 %v781_v28, %v779_v31  ;;  %v531_v53 = vadd.f32 %v530_v52, %v3005_v5 }
 0x124   :  { %v532_v32 = vpop.f32.mrf.mxu0 }
 0x125   :  { %v888_v33 = vpack.c.bf16 %v782_v30, %v780_v29  ;;  %v533_v36 = vadd.f32 %v532_v32, %v3007_v6  ;;  %v783_v43 = vmax.f32 %v531_v53, 0.0 }
 0x126   :  { %v534_v35 = vpop.f32.mrf.mxu0 }
 0x127   :  { %v535_v37 = vadd.f32 %v534_v35, %v3005_v5  ;;  %1178 = vmatprep.mubr.bf16.mxu1 %v888_v33  ;;  %v784_v42 = vmax.f32 %v533_v36, 0.0 }
 0x128   :  { %v536_v38 = vpop.f32.mrf.mxu0  ;;  %1179 = vmatmul.mubr.bf16.gmra.mxu1 %v887_v34 }
 0x129   :  { %v537_v39 = vadd.f32 %v536_v38, %v3007_v6  ;;  %v785_v40 = vmax.f32 %v535_v37, 0.0 }
 0x12a   :  { %v540_v41 = vpop.f32.mrf.mxu0 }
 0x12b   :  { %v786_v62 = vmax.f32 %v537_v39, 0.0  ;;  %v889_v49 = vpack.c.bf16 %v785_v40, %v783_v43  ;;  %v541_v58 = vadd.f32 %v540_v41, %v3005_v5 }
 0x12c   :  { %v542_v44 = vpop.f32.mrf.mxu0 }
 0x12d   :  { %v890_v45 = vpack.c.bf16 %v786_v62, %v784_v42  ;;  %v543_v54 = vadd.f32 %v542_v44, %v3007_v6  ;;  %v787_v4 = vmax.f32 %v541_v58, 0.0 }
 0x12e   :  { %v544_v51 = vpop.f32.mrf.mxu0 }
 0x12f   :  { %v545_v56 = vadd.f32 %v544_v51, %v3005_v5  ;;  %1186 = vmatprep.mubr.bf16.mxu1 %v890_v45  ;;  %v788_v2 = vmax.f32 %v543_v54, 0.0 }
 0x130   :  { %v546_v59 = vpop.f32.mrf.mxu0  ;;  %1187 = vmatmul.mubr.bf16.gmra.mxu1 %v889_v49 }
 0x131   :  { %v547_v61 = vadd.f32 %v546_v59, %v3007_v6  ;;  %v789_v63 = vmax.f32 %v545_v56, 0.0 }
 0x132   :  { %v550_v0 = vpop.f32.mrf.mxu0 }
 0x133   :  { %v790_v3 = vmax.f32 %v547_v61, 0.0  ;;  %v891_v8 = vpack.c.bf16 %v789_v63, %v787_v4  ;;  %v551_v1 = vadd.f32 %v550_v0, %v3005_v5 }
 0x134   :  { %v552_v50 = vpop.f32.mrf.mxu0 }
 0x135   :  { %v892_v7 = vpack.c.bf16 %v790_v3, %v788_v2  ;;  %v553_v47 = vadd.f32 %v552_v50, %v3007_v6  ;;  %v791_v15 = vmax.f32 %v551_v1, 0.0 }
 0x136   :  { %v554_v9 = vpop.f32.mrf.mxu0 }
 0x137   :  { %v555_v60 = vadd.f32 %v554_v9, %v3005_v5  ;;  %1194 = vmatprep.mubr.bf16.mxu1 %v892_v7  ;;  %v792_v14 = vmax.f32 %v553_v47, 0.0 }
 0x138   :  { %v556_v10 = vpop.f32.mrf.mxu0  ;;  %1195 = vmatmul.mubr.bf16.gmra.mxu1 %v891_v8 }
 0x139   :  { %v557_v11 = vadd.f32 %v556_v10, %v3007_v6  ;;  %v793_v12 = vmax.f32 %v555_v60, 0.0 }
 0x13a   :  { %v560_v13 = vpop.f32.mrf.mxu0 }
 0x13b   :  { %v794_v57 = vmax.f32 %v557_v11, 0.0  ;;  %v893_v17 = vpack.c.bf16 %v793_v12, %v791_v15  ;;  %v561_v21 = vadd.f32 %v560_v13, %v3005_v5 }
 0x13c   :  { %v562_v16 = vpop.f32.mrf.mxu0 }
 0x13d   :  { %v894_v48 = vpack.c.bf16 %v794_v57, %v792_v14  ;;  %v563_v19 = vadd.f32 %v562_v16, %v3007_v6  ;;  %v795_v46 = vmax.f32 %v561_v21, 0.0 }
 0x13e   :  { %v564_v18 = vpop.f32.mrf.mxu0 }
 0x13f   :  { %v565_v20 = vadd.f32 %v564_v18, %v3005_v5  ;;  %1202 = vmatprep.mubr.bf16.mxu1 %v894_v48  ;;  %v796_v25 = vmax.f32 %v563_v19, 0.0 }
 0x140   :  { %v566_v55 = vpop.f32.mrf.mxu0  ;;  %1203 = vmatmul.mubr.bf16.gmra.mxu1 %v893_v17 }
 0x141   :  { %v567_v22 = vadd.f32 %v566_v55, %v3007_v6  ;;  %v797_v23 = vmax.f32 %v565_v20, 0.0 }
 0x142   :  { %v570_v24 = vpop.f32.mrf.mxu0 }
 0x143   :  { %v798_v26 = vmax.f32 %v567_v22, 0.0  ;;  %v895_v52 = vpack.c.bf16 %v797_v23, %v795_v46  ;;  %v571_v32 = vadd.f32 %v570_v24, %v3005_v5 }
 0x144   :  { %v572_v27 = vpop.f32.mrf.mxu0 }
 0x145   :  { %v896_v28 = vpack.c.bf16 %v798_v26, %v796_v25  ;;  %v573_v30 = vadd.f32 %v572_v27, %v3007_v6  ;;  %v799_v38 = vmax.f32 %v571_v32, 0.0 }
 0x146   :  { %v574_v29 = vpop.f32.mrf.mxu0 }
 0x147   :  { %v575_v31 = vadd.f32 %v574_v29, %v3005_v5  ;;  %1210 = vmatprep.mubr.bf16.mxu1 %v896_v28  ;;  %v800_v37 = vmax.f32 %v573_v30, 0.0 }
 0x148   :  { %v576_v33 = vpop.f32.mrf.mxu0  ;;  %1211 = vmatmul.mubr.bf16.gmra.mxu1 %v895_v52 }
 0x149   :  { %v577_v34 = vadd.f32 %v576_v33, %v3007_v6  ;;  %v801_v35 = vmax.f32 %v575_v31, 0.0 }
 0x14a   :  { %v580_v36 = vpop.f32.mrf.mxu0 }
 0x14b   :  { %v802_v53 = vmax.f32 %v577_v34, 0.0  ;;  %v897_v41 = vpack.c.bf16 %v801_v35, %v799_v38  ;;  %v581_v44 = vadd.f32 %v580_v36, %v3005_v5 }
 0x14c   :  { %v582_v39 = vpop.f32.mrf.mxu0 }
 0x14d   :  { %v898_v40 = vpack.c.bf16 %v802_v53, %v800_v37  ;;  %v583_v62 = vadd.f32 %v582_v39, %v3007_v6  ;;  %v803_v59 = vmax.f32 %v581_v44, 0.0 }
 0x14e   :  { %v584_v42 = vpop.f32.mrf.mxu0 }
 0x14f   :  { %v585_v43 = vadd.f32 %v584_v42, %v3005_v5  ;;  %1218 = vmatprep.mubr.bf16.mxu1 %v898_v40  ;;  %v804_v56 = vmax.f32 %v583_v62, 0.0 }
 0x150   :  { %v586_v45 = vpop.f32.mrf.mxu0  ;;  %1219 = vmatmul.mubr.bf16.gmra.mxu1 %v897_v41 }
 0x151   :  { %v587_v49 = vadd.f32 %v586_v45, %v3007_v6  ;;  %v805_v51 = vmax.f32 %v585_v43, 0.0 }
 0x152   :  { %v590_v54 = vpop.f32.mrf.mxu0 }
 0x153   :  { %v806_v58 = vmax.f32 %v587_v49, 0.0  ;;  %v899_v0 = vpack.c.bf16 %v805_v51, %v803_v59  ;;  %v591_v50 = vadd.f32 %v590_v54, %v3005_v5 }
 0x154   :  { %v592_v61 = vpop.f32.mrf.mxu0 }
 0x155   :  { %v900_v63 = vpack.c.bf16 %v806_v58, %v804_v56  ;;  %v593_v3 = vadd.f32 %v592_v61, %v3007_v6  ;;  %v807_v10 = vmax.f32 %v591_v50, 0.0 }
 0x156   :  { %v594_v2 = vpop.f32.mrf.mxu0 }
 0x157   :  { %v595_v4 = vadd.f32 %v594_v2, %v3005_v5  ;;  %1226 = vmatprep.mubr.bf16.mxu1 %v900_v63  ;;  %v808_v60 = vmax.f32 %v593_v3, 0.0 }
 0x158   :  { %v596_v7 = vpop.f32.mrf.mxu0  ;;  %1227 = vmatmul.mubr.bf16.gmra.mxu1 %v899_v0 }
 0x159   :  { %v597_v8 = vadd.f32 %v596_v7, %v3007_v6  ;;  %v809_v9 = vmax.f32 %v595_v4, 0.0 }
 0x15a   :  { %v600_v47 = vpop.f32.mrf.mxu0 }
 0x15b   :  { %v810_v1 = vmax.f32 %v597_v8, 0.0  ;;  %v901_v13 = vpack.c.bf16 %v809_v9, %v807_v10  ;;  %v601_v16 = vadd.f32 %v600_v47, %v3005_v5 }
 0x15c   :  { %v602_v11 = vpop.f32.mrf.mxu0 }
 0x15d   :  { %v902_v12 = vpack.c.bf16 %v810_v1, %v808_v60  ;;  %v603_v57 = vadd.f32 %v602_v11, %v3007_v6  ;;  %v811_v55 = vmax.f32 %v601_v16, 0.0 }
 0x15e   :  { %v604_v14 = vpop.f32.mrf.mxu0 }
 0x15f   :  { %v605_v15 = vadd.f32 %v604_v14, %v3005_v5  ;;  %1234 = vmatprep.mubr.bf16.mxu1 %v902_v12  ;;  %v812_v20 = vmax.f32 %v603_v57, 0.0 }
 0x160   :  { %v606_v48 = vpop.f32.mrf.mxu0  ;;  %1235 = vmatmul.mubr.bf16.gmra.mxu1 %v901_v13 }
 0x161   :  { %v607_v17 = vadd.f32 %v606_v48, %v3007_v6  ;;  %v813_v18 = vmax.f32 %v605_v15, 0.0 }
 0x162   :  { %v610_v19 = vpop.f32.mrf.mxu0 }
 0x163   :  { %v814_v21 = vmax.f32 %v607_v17, 0.0  ;;  %v903_v24 = vpack.c.bf16 %v813_v18, %v811_v55  ;;  %v611_v27 = vadd.f32 %v610_v19, %v3005_v5 }
 0x164   :  { %v612_v22 = vpop.f32.mrf.mxu0 }
 0x165   :  { %v904_v23 = vpack.c.bf16 %v814_v21, %v812_v20  ;;  %v613_v26 = vadd.f32 %v612_v22, %v3007_v6  ;;  %v815_v33 = vmax.f32 %v611_v27, 0.0 }
 0x166   :  { %v614_v25 = vpop.f32.mrf.mxu0 }
 0x167   :  { %v615_v46 = vadd.f32 %v614_v25, %v3005_v5  ;;  %1242 = vmatprep.mubr.bf16.mxu1 %v904_v23  ;;  %v816_v31 = vmax.f32 %v613_v26, 0.0 }
 0x168   :  { %v616_v28 = vpop.f32.mrf.mxu0  ;;  %1243 = vmatmul.mubr.bf16.gmra.mxu1 %v903_v24 }
 0x169   :  { %v617_v52 = vadd.f32 %v616_v28, %v3007_v6  ;;  %v817_v29 = vmax.f32 %v615_v46, 0.0 }
 0x16a   :  { %v620_v30 = vpop.f32.mrf.mxu0 }
 0x16b   :  { %v818_v32 = vmax.f32 %v617_v52, 0.0  ;;  %v905_v36 = vpack.c.bf16 %v817_v29, %v815_v33  ;;  %v621_v39 = vadd.f32 %v620_v30, %v3005_v5 }
 0x16c   :  { %v622_v34 = vpop.f32.mrf.mxu0 }
 0x16d   :  { %v906_v35 = vpack.c.bf16 %v818_v32, %v816_v31  ;;  %v623_v53 = vadd.f32 %v622_v34, %v3007_v6  ;;  %v819_v45 = vmax.f32 %v621_v39, 0.0 }
 0x16e   :  { %v624_v37 = vpop.f32.mrf.mxu0 }
 0x16f   :  { %v625_v38 = vadd.f32 %v624_v37, %v3005_v5  ;;  %1250 = vmatprep.mubr.bf16.mxu1 %v906_v35  ;;  %v820_v43 = vmax.f32 %v623_v53, 0.0 }
 0x170   :  { %v626_v40 = vpop.f32.mrf.mxu0  ;;  %1251 = vmatmul.mubr.bf16.gmra.mxu1 %v905_v36 }
 0x171   :  { %v627_v41 = vadd.f32 %v626_v40, %v3007_v6  ;;  %v821_v42 = vmax.f32 %v625_v38, 0.0 }
 0x172   :  { %v630_v62 = vpop.f32.mrf.mxu0 }
 0x173   :  { %v822_v44 = vmax.f32 %v627_v41, 0.0  ;;  %v907_v54 = vpack.c.bf16 %v821_v42, %v819_v45  ;;  %v631_v61 = vadd.f32 %v630_v62, %v3005_v5 }
 0x174   :  { %v632_v49 = vpop.f32.mrf.mxu0 }
 0x175   :  { %v908_v51 = vpack.c.bf16 %v822_v44, %v820_v43  ;;  %v633_v58 = vadd.f32 %v632_v49, %v3007_v6  ;;  %v823_v7 = vmax.f32 %v631_v61, 0.0 }
 0x176   :  { %v634_v56 = vpop.f32.mrf.mxu0 }
 0x177   :  { %v635_v59 = vadd.f32 %v634_v56, %v3005_v5  ;;  %1258 = vmatprep.mubr.bf16.mxu1 %v908_v51  ;;  %v824_v4 = vmax.f32 %v633_v58, 0.0 }
 0x178   :  { %v636_v63 = vpop.f32.mrf.mxu0  ;;  %1259 = vmatmul.mubr.bf16.gmra.mxu1 %v907_v54 }
 0x179   :  { %v637_v0 = vadd.f32 %v636_v63, %v3007_v6  ;;  %v825_v2 = vmax.f32 %v635_v59, 0.0 }
 0x17a   :  { %v640_v3 = vpop.f32.mrf.mxu0 }
 0x17b   :  { %v826_v50 = vmax.f32 %v637_v0, 0.0  ;;  %v909_v47 = vpack.c.bf16 %v825_v2, %v823_v7  ;;  %v641_v11 = vadd.f32 %v640_v3, %v3005_v5 }
 0x17c   :  { %v642_v8 = vpop.f32.mrf.mxu0 }
 0x17d   :  { %v910_v9 = vpack.c.bf16 %v826_v50, %v824_v4  ;;  %v643_v1 = vadd.f32 %v642_v8, %v3007_v6  ;;  %v827_v48 = vmax.f32 %v641_v11, 0.0 }
 0x17e   :  { %v644_v60 = vpop.f32.mrf.mxu0 }
 0x17f   :  { %v645_v10 = vadd.f32 %v644_v60, %v3005_v5  ;;  %1266 = vmatprep.mubr.bf16.mxu1 %v910_v9  ;;  %v828_v15 = vmax.f32 %v643_v1, 0.0 }
 0x180   :  { %v646_v12 = vpop.f32.mrf.mxu0  ;;  %1267 = vmatmul.mubr.bf16.gmra.mxu1 %v909_v47 }
 0x181   :  { %v647_v13 = vadd.f32 %v646_v12, %v3007_v6  ;;  %v829_v14 = vmax.f32 %v645_v10, 0.0 }
 0x182   :  { %v650_v57 = vpop.f32.mrf.mxu0 }
 0x183   :  { %v830_v16 = vmax.f32 %v647_v13, 0.0  ;;  %v911_v19 = vpack.c.bf16 %v829_v14, %v827_v48  ;;  %v651_v22 = vadd.f32 %v650_v57, %v3005_v5 }
 0x184   :  { %v652_v17 = vpop.f32.mrf.mxu0 }
 0x185   :  { %v912_v18 = vpack.c.bf16 %v830_v16, %v828_v15  ;;  %v653_v21 = vadd.f32 %v652_v17, %v3007_v6  ;;  %v831_v28 = vmax.f32 %v651_v22, 0.0 }
 0x186   :  { %v654_v20 = vpop.f32.mrf.mxu0 }
 0x187   :  { %v655_v55 = vadd.f32 %v654_v20, %v3005_v5  ;;  %1274 = vmatprep.mubr.bf16.mxu1 %v912_v18  ;;  %v832_v46 = vmax.f32 %v653_v21, 0.0 }
 0x188   :  { %v656_v23 = vpop.f32.mrf.mxu0  ;;  %1275 = vmatmul.mubr.bf16.gmra.mxu1 %v911_v19 }
 0x189   :  { %v657_v24 = vadd.f32 %v656_v23, %v3007_v6  ;;  %v833_v25 = vmax.f32 %v655_v55, 0.0 }
 0x18a   :  { %v660_v26 = vpop.f32.mrf.mxu0 }
 0x18b   :  { %v834_v27 = vmax.f32 %v657_v24, 0.0  ;;  %v913_v30 = vpack.c.bf16 %v833_v25, %v831_v28  ;;  %v661_v34 = vadd.f32 %v660_v26, %v3005_v5 }
 0x18c   :  { %v662_v52 = vpop.f32.mrf.mxu0 }
 0x18d   :  { %v914_v29 = vpack.c.bf16 %v834_v27, %v832_v46  ;;  %v663_v32 = vadd.f32 %v662_v52, %v3007_v6  ;;  %v835_v40 = vmax.f32 %v661_v34, 0.0  ;;  %v3155_v27 = vld [vmem:[%s3711_s4] ss:$0 sm:$0xff] }
 0x18e   :  { %v664_v31 = vpop.f32.mrf.mxu0 }
 0x18f   :  { %v665_v33 = vadd.f32 %v664_v31, %v3005_v5  ;;  %1282 = vmatprep.mubr.bf16.mxu1 %v914_v29  ;;  %v836_v38 = vmax.f32 %v663_v32, 0.0 }
 0x190   :  { %v666_v35 = vpop.f32.mrf.mxu0  ;;  %1283 = vmatmul.mubr.bf16.gmra.mxu1 %v913_v30 }
 0x191   :  { %v667_v36 = vadd.f32 %v666_v35, %v3007_v6  ;;  %v837_v37 = vmax.f32 %v665_v33, 0.0 }
 0x192   :  { %v670_v53 = vpop.f32.mrf.mxu0 }
 0x193   :  { %v838_v39 = vmax.f32 %v667_v36, 0.0  ;;  %v915_v62 = vpack.c.bf16 %v837_v37, %v835_v40  ;;  %v671_v49 = vadd.f32 %v670_v53, %v3005_v5 }
 0x194   :  { %v672_v41 = vpop.f32.mrf.mxu0 }
 0x195   :  { %v916_v42 = vpack.c.bf16 %v838_v39, %v836_v38  ;;  %v673_v44 = vadd.f32 %v672_v41, %v3007_v6  ;;  %v839_v63 = vmax.f32 %v671_v49, 0.0  ;;  %v3165_v39 = vld [vmem:[%s3712_s5] ss:$0 sm:$0xff] }
 0x196   :  { %v674_v43 = vpop.f32.mrf.mxu0 }
 0x197   :  { %v675_v45 = vadd.f32 %v674_v43, %v3005_v5  ;;  %1290 = vmatprep.mubr.bf16.mxu1 %v916_v42  ;;  %v840_v59 = vmax.f32 %v673_v44, 0.0 }
 0x198   :  { %v676_v51 = vpop.f32.mrf.mxu0  ;;  %1291 = vmatmul.mubr.bf16.gmra.mxu1 %v915_v62 }
 0x199   :  { %v677_v54 = vadd.f32 %v676_v51, %v3007_v6  ;;  %v841_v56 = vmax.f32 %v675_v45, 0.0 }
 0x19a   :  { %v680_v58 = vpop.f32.mrf.mxu0 }
 0x19b   :  { %v842_v61 = vmax.f32 %v677_v54, 0.0  ;;  %v917_v3 = vpack.c.bf16 %v841_v56, %v839_v63  ;;  %v681_v8 = vadd.f32 %v680_v58, %v3005_v5 }
 0x19c   :  { %v682_v0 = vpop.f32.mrf.mxu0 }
 0x19d   :  { %v918_v2 = vpack.c.bf16 %v842_v61, %v840_v59  ;;  %v683_v50 = vadd.f32 %v682_v0, %v3007_v6  ;;  %v843_v12 = vmax.f32 %v681_v8, 0.0 }
 0x19e   :  { %v684_v4 = vpop.f32.mrf.mxu0 }
 0x19f   :  { %v685_v7 = vadd.f32 %v684_v4, %v3005_v5  ;;  %1298 = vmatprep.mubr.bf16.mxu1 %v918_v2  ;;  %v844_v10 = vmax.f32 %v683_v50, 0.0 }
 0x1a0   :  { %v686_v9 = vpop.f32.mrf.mxu0  ;;  %1299 = vmatmul.mubr.bf16.gmra.mxu1 %v917_v3 }
 0x1a1   :  { %v687_v47 = vadd.f32 %v686_v9, %v3007_v6  ;;  %v845_v60 = vmax.f32 %v685_v7, 0.0  ;;  %v12_v9 = vstv %s3713_s6 }
 0x1a2   :  { %v690_v1 = vpop.f32.mrf.mxu0  ;;  %13 = vst [vmem:[#allocation2] sm:$0x1] %v12_v9 }
 0x1a3   :  { %v846_v11 = vmax.f32 %v687_v47, 0.0  ;;  %v919_v57 = vpack.c.bf16 %v845_v60, %v843_v12  ;;  %v691_v17 = vadd.f32 %v690_v1, %v3005_v5 }
 0x1a4   :  { %v692_v13 = vpop.f32.mrf.mxu0 }
 0x1a5   :  { %v920_v14 = vpack.c.bf16 %v846_v11, %v844_v10  ;;  %v693_v16 = vadd.f32 %v692_v13, %v3007_v6  ;;  %v847_v23 = vmax.f32 %v691_v17, 0.0 }
 0x1a6   :  { %v694_v15 = vpop.f32.mrf.mxu0 }
 0x1a7   :  { %v695_v48 = vadd.f32 %v694_v15, %v3005_v5  ;;  %1306 = vmatprep.mubr.bf16.mxu1 %v920_v14  ;;  %v848_v55 = vmax.f32 %v693_v16, 0.0 }
 0x1a8   :  { %v696_v18 = vpop.f32.mrf.mxu0  ;;  %1307 = vmatmul.mubr.bf16.gmra.mxu1 %v919_v57 }
 0x1a9   :  { %v697_v19 = vadd.f32 %v696_v18, %v3007_v6  ;;  %v849_v20 = vmax.f32 %v695_v48, 0.0 }
 0x1aa   :  { %v700_v21 = vpop.f32.mrf.mxu0 }
 0x1ab   :  { %v850_v22 = vmax.f32 %v697_v19, 0.0  ;;  %v921_v26 = vpack.c.bf16 %v849_v20, %v847_v23  ;;  %v701_v29 = vadd.f32 %v700_v21, %v3005_v5 }
 0x1ac   :  { %v702_v24 = vpop.f32.mrf.mxu0 }
 0x1ad   :  { %v922_v25 = vpack.c.bf16 %v850_v22, %v848_v55  ;;  %v703_v28 = vadd.f32 %v702_v24, %v3007_v6  ;;  %v851_v40 = vmax.f32 %v701_v29, 0.0 }
 0x1ae   :  { %v704_v46 = vpop.f32.mrf.mxu0 }
 0x1af   :  { %v705_v52 = vadd.f32 %v704_v46, %v3005_v5  ;;  %1314 = vmatprep.mubr.bf16.mxu1 %v922_v25  ;;  %v852_v37 = vmax.f32 %v703_v28, 0.0 }
 0x1b0   :  { %v706_v30 = vpop.f32.mrf.mxu0  ;;  %v1124_v31 = vpop.f32.mrf.mxu1  ;;  %1315 = vmatmul.mubr.bf16.gmra.mxu1 %v921_v26 }
 0x1b1   :  { %v707_v32 = vadd.f32 %v706_v30, %v3007_v6  ;;  %v1125_v33 = vadd.f32 %v3155_v27, %v1124_v31  ;;  %v853_v34 = vmax.f32 %v705_v52, 0.0 }
 0x1b2   :  { %v710_v35 = vpop.f32.mrf.mxu0  ;;  %v1126_v36 = vpop.f32.mrf.mxu1 }
 0x1b3   :  { %v854_v53 = vmax.f32 %v707_v32, 0.0  ;;  %v1361_v38 = vmax.f32 %v1125_v33, 0.0  ;;  %v923_v44 = vpack.c.bf16 %v853_v34, %v851_v40  ;;  %v711_v59 = vadd.f32 %v710_v35, %v3005_v5 }
 0x1b4   :  { %v712_v41 = vpop.f32.mrf.mxu0  ;;  %v1127_v42 = vpop.f32.mrf.mxu1 }
 0x1b5   :  { %v924_v62 = vpack.c.bf16 %v854_v53, %v852_v37  ;;  %v1128_v43 = vadd.f32 %v3155_v27, %v1127_v42  ;;  %v1432_v51 = vmul.f32 %v3165_v39, %v1361_v38  ;;  %v713_v54 = vadd.f32 %v712_v41, %v3007_v6 }
 0x1b6   :  { %v714_v45 = vpop.f32.mrf.mxu0  ;;  %v1129_v49 = vpop.f32.mrf.mxu1  ;;  %v855_v10 = vmax.f32 %v711_v59, 0.0 }
 0x1b7   :  { %v1362_v56 = vmax.f32 %v1128_v43, 0.0  ;;  %v715_v58 = vadd.f32 %v714_v45, %v3005_v5  ;;  %1322 = vmatprep.mubr.bf16.mxu1 %v924_v62  ;;  %v1509_v0 = vsel %vm1490_vm1, %v1432_v51, 0.0  ;;  %v856_v47 = vmax.f32 %v713_v54, 0.0 }
 0x1b8   :  { %v716_v61 = vpop.f32.mrf.mxu0  ;;  %v1132_v63 = vpop.f32.mrf.mxu1  ;;  %1323 = vmatmul.mubr.bf16.gmra.mxu1 %v923_v44  ;;  %1510 = vadd.xlane.f32.xlu0 %v1509_v0 }
 0x1b9   :  { %v717_v2 = vadd.f32 %v716_v61, %v3007_v6  ;;  %v1133_v3 = vadd.f32 %v3155_v27, %v1132_v63  ;;  %v1433_v4 = vmul.f32 %v3165_v39, %v1362_v56  ;;  %v857_v50 = vmax.f32 %v715_v58, 0.0 }
 0x1ba   :  { %v720_v7 = vpop.f32.mrf.mxu0  ;;  %v1134_v8 = vpop.f32.mrf.mxu1 }
 0x1bb   :  { %v858_v60 = vmax.f32 %v717_v2, 0.0  ;;  %v1363_v1 = vmax.f32 %v1133_v3, 0.0  ;;  %v1512_v13 = vsel %vm1490_vm1, %v1433_v4, 0.0  ;;  %v925_v15 = vpack.c.bf16 %v857_v50, %v855_v10 }
 0x1bc   :  { %v722_v11 = vpop.f32.mrf.mxu0  ;;  %v1135_v12 = vpop.f32.mrf.mxu1  ;;  %1513 = vadd.xlane.f32.xlu1 %v1512_v13  ;;  %v721_v21 = vadd.f32 %v720_v7, %v3005_v5 }
 0x1bd   :  { %v926_v14 = vpack.c.bf16 %v858_v60, %v856_v47  ;;  %v1136_v57 = vadd.f32 %v3155_v27, %v1135_v12  ;;  %v1434_v17 = vmul.f32 %v3165_v39, %v1363_v1  ;;  %v723_v18 = vadd.f32 %v722_v11, %v3007_v6 }
 0x1be   :  { %v724_v16 = vpop.f32.mrf.mxu0  ;;  %v1137_v48 = vpop.f32.mrf.mxu1  ;;  %v859_v32 = vmax.f32 %v721_v21, 0.0 }
 0x1bf   :  { %v1364_v19 = vmax.f32 %v1136_v57, 0.0  ;;  %v725_v20 = vadd.f32 %v724_v16, %v3005_v5  ;;  %1330 = vmatprep.mubr.bf16.mxu1 %v926_v14  ;;  %v1515_v23 = vsel %vm1490_vm1, %v1434_v17, 0.0  ;;  %v860_v29 = vmax.f32 %v723_v18, 0.0 }
 0x1c0   :  { %v726_v55 = vpop.f32.mrf.mxu0  ;;  %v1140_v22 = vpop.f32.mrf.mxu1  ;;  %1331 = vmatmul.mubr.bf16.gmra.mxu1 %v925_v15  ;;  %1516 = vadd.xlane.f32.xlu0 %v1515_v23 }
 0x1c1   :  { %v727_v24 = vadd.f32 %v726_v55, %v3007_v6  ;;  %v1141_v25 = vadd.f32 %v3155_v27, %v1140_v22  ;;  %v1435_v26 = vmul.f32 %v3165_v39, %v1364_v19  ;;  %v861_v46 = vmax.f32 %v725_v20, 0.0 }
 0x1c2   :  { %v730_v28 = vpop.f32.mrf.mxu0  ;;  %v1142_v52 = vpop.f32.mrf.mxu1 }
 0x1c3   :  { %v862_v30 = vmax.f32 %v727_v24, 0.0  ;;  %v1365_v31 = vmax.f32 %v1141_v25, 0.0  ;;  %v1518_v35 = vsel %vm1490_vm1, %v1435_v26, 0.0  ;;  %v927_v53 = vpack.c.bf16 %v861_v46, %v859_v32 }
 0x1c4   :  { %v732_v33 = vpop.f32.mrf.mxu0  ;;  %v1143_v34 = vpop.f32.mrf.mxu1  ;;  %1519 = vadd.xlane.f32.xlu1 %v1518_v35  ;;  %v731_v44 = vadd.f32 %v730_v28, %v3005_v5 }
 0x1c5   :  { %v928_v36 = vpack.c.bf16 %v862_v30, %v860_v29  ;;  %v1144_v37 = vadd.f32 %v3155_v27, %v1143_v34  ;;  %v1436_v41 = vmul.f32 %v3165_v39, %v1365_v31  ;;  %v733_v42 = vadd.f32 %v732_v33, %v3007_v6 }
 0x1c6   :  { %v734_v38 = vpop.f32.mrf.mxu0  ;;  %v1145_v40 = vpop.f32.mrf.mxu1  ;;  %v863_v4 = vmax.f32 %v731_v44, 0.0 }
 0x1c7   :  { %v1366_v62 = vmax.f32 %v1144_v37, 0.0  ;;  %v735_v43 = vadd.f32 %v734_v38, %v3005_v5  ;;  %1338 = vmatprep.mubr.bf16.mxu1 %v928_v36  ;;  %v1521_v51 = vsel %vm1490_vm1, %v1436_v41, 0.0  ;;  %v864_v0 = vmax.f32 %v733_v42, 0.0 }
 0x1c8   :  { %v736_v45 = vpop.f32.mrf.mxu0  ;;  %v1148_v49 = vpop.f32.mrf.mxu1  ;;  %1339 = vmatmul.mubr.bf16.gmra.mxu1 %v927_v53  ;;  %1522 = vadd.xlane.f32.xlu0 %v1521_v51 }
 0x1c9   :  { %v737_v54 = vadd.f32 %v736_v45, %v3007_v6  ;;  %v1149_v56 = vadd.f32 %v3155_v27, %v1148_v49  ;;  %v1437_v58 = vmul.f32 %v3165_v39, %v1366_v62  ;;  %v865_v59 = vmax.f32 %v735_v43, 0.0 }
 0x1ca   :  { %v1100_v61 = vpop.f32.mrf.mxu0  ;;  %v1150_v63 = vpop.f32.mrf.mxu1 }
 0x1cb   :  { %v866_v2 = vmax.f32 %v737_v54, 0.0  ;;  %v1367_v3 = vmax.f32 %v1149_v56, 0.0  ;;  %v1101_v5 = vadd.f32 %v3155_v27, %v1100_v61  ;;  %v1524_v7 = vsel %vm1490_vm1, %v1437_v58, 0.0 }
 0x1cc   :  { %v1151_v50 = vpop.f32.mrf.mxu1  ;;  %v1102_v8 = vpop.f32.mrf.mxu0  ;;  %1525 = vadd.xlane.f32.xlu1 %v1524_v7  ;;  %v929_v1 = vpack.c.bf16 %v865_v59, %v863_v4 }
 0x1cd   :  { %v930_v9 = vpack.c.bf16 %v866_v2, %v864_v0  ;;  %v1355_v6 = vmax.f32 %v1101_v5, 0.0  ;;  %v1152_v47 = vadd.f32 %v3155_v27, %v1151_v50  ;;  %v1438_v60 = vmul.f32 %v3165_v39, %v1367_v3 }
 0x1ce   :  { %v1103_v10 = vpop.f32.mrf.mxu0  ;;  %v1153_v11 = vpop.f32.mrf.mxu1 }
 0x1cf   :  { %v1368_v12 = vmax.f32 %v1152_v47, 0.0  ;;  %v1104_v13 = vadd.f32 %v3155_v27, %v1103_v10  ;;  %1346 = vmatprep.mubr.bf16.mxu1 %v930_v9  ;;  %v1527_v14 = vsel %vm1490_vm1, %v1438_v60, 0.0  ;;  %v1426_v57 = vmul.f32 %v3165_v39, %v1355_v6 }
 0x1d0   :  { %v1156_v15 = vpop.f32.mrf.mxu1  ;;  %1347 = vmatmul.mubr.bf16.gmra.mxu1 %v929_v1  ;;  %1528 = vadd.xlane.f32.xlu0 %v1527_v14  ;;  %v1105_v16 = vpop.f32.mrf.mxu0 }
 0x1d1   :  { %v1356_v48 = vmax.f32 %v1104_v13, 0.0  ;;  %v1157_v17 = vadd.f32 %v3155_v27, %v1156_v15  ;;  %v1439_v18 = vmul.f32 %v3165_v39, %v1368_v12  ;;  %v1491_v21 = vsel %vm1490_vm1, %v1426_v57, 0.0 }
 0x1d2   :  { %v1108_v19 = vpop.f32.mrf.mxu0  ;;  %v1158_v20 = vpop.f32.mrf.mxu1 }
 0x1d3   :  { %v1369_v55 = vmax.f32 %v1157_v17, 0.0  ;;  %v1109_v22 = vadd.f32 %v3155_v27, %v1108_v19  ;;  %v1530_v23 = vsel %vm1490_vm1, %v1439_v18, 0.0  ;;  %v1427_v24 = vmul.f32 %v3165_v39, %v1356_v48 }
 0x1d4   :  { %v1159_v25 = vpop.f32.mrf.mxu1  ;;  %1531 = vadd.xlane.f32.xlu1 %v1530_v23  ;;  %v1110_v26 = vpop.f32.mrf.mxu0  ;;  %1492 = vadd.xlane.f32.xlu0 %v1491_v21 }
 0x1d5   :  { %v1357_v46 = vmax.f32 %v1109_v22, 0.0  ;;  %v1160_v28 = vadd.f32 %v3155_v27, %v1159_v25  ;;  %v1494_v30 = vsel %vm1490_vm1, %v1427_v24, 0.0  ;;  %v1440_v34 = vmul.f32 %v3165_v39, %v1369_v55 }
 0x1d6   :  { %v1111_v52 = vpop.f32.mrf.mxu0  ;;  %v1161_v29 = vpop.f32.mrf.mxu1 }
 0x1d7   :  { %v1370_v31 = vmax.f32 %v1160_v28, 0.0  ;;  %v1112_v32 = vadd.f32 %v3155_v27, %v1111_v52  ;;  %v1428_v33 = vmul.f32 %v3165_v39, %v1357_v46  ;;  %v1533_v44 = vsel %vm1490_vm1, %v1440_v34, 0.0 }
 0x1d8   :  { %v1113_v35 = vpop.f32.mrf.mxu0  ;;  %v1164_v36 = vpop.f32.mrf.mxu1  ;;  %1495 = vadd.xlane.f32.xlu0 %v1494_v30 }
 0x1d9   :  { %v1358_v37 = vmax.f32 %v1112_v32, 0.0  ;;  %v1165_v53 = vadd.f32 %v3155_v27, %v1164_v36  ;;  %v1497_v38 = vsel %vm1490_vm1, %v1428_v33, 0.0  ;;  %v1441_v40 = vmul.f32 %v3165_v39, %v1370_v31 }
 0x1da   :  { %v1116_v41 = vpop.f32.mrf.mxu0  ;;  %v1166_v42 = vpop.f32.mrf.mxu1  ;;  %1498 = vadd.xlane.f32.xlu1 %v1497_v38 }
 0x1db   :  { %v1371_v62 = vmax.f32 %v1165_v53, 0.0  ;;  %v1117_v43 = vadd.f32 %v3155_v27, %v1116_v41  ;;  %v1536_v51 = vsel %vm1490_vm1, %v1441_v40, 0.0  ;;  %v1429_v59 = vmul.f32 %v3165_v39, %v1358_v37 }
 0x1dc   :  { %v1118_v45 = vpop.f32.mrf.mxu0  ;;  %v1167_v49 = vpop.f32.mrf.mxu1  ;;  %1534 = vadd.xlane.f32.xlu0 %v1533_v44 }
 0x1dd   :  { %v1359_v54 = vmax.f32 %v1117_v43, 0.0  ;;  %v1168_v56 = vadd.f32 %v3155_v27, %v1167_v49  ;;  %v1442_v58 = vmul.f32 %v3165_v39, %v1371_v62  ;;  %v1500_v9 = vsel %vm1490_vm1, %v1429_v59, 0.0 }
 0x1de   :  { %v1119_v61 = vpop.f32.mrf.mxu0  ;;  %v1169_v63 = vpop.f32.mrf.mxu1  ;;  %1537 = vadd.xlane.f32.xlu1 %v1536_v51 }
 0x1df   :  { %v1372_v0 = vmax.f32 %v1168_v56, 0.0  ;;  %v1120_v2 = vadd.f32 %v3155_v27, %v1119_v61  ;;  %v1539_v3 = vsel %vm1490_vm1, %v1442_v58, 0.0  ;;  %v1430_v5 = vmul.f32 %v3165_v39, %v1359_v54 }
 0x1e0   :  { %v1121_v4 = vpop.f32.mrf.mxu0  ;;  %v1172_v50 = vpop.f32.mrf.mxu1  ;;  %1540 = vadd.xlane.f32.xlu0 %v1539_v3 }
 0x1e1   :  { %v1360_v7 = vmax.f32 %v1120_v2, 0.0  ;;  %v1173_v8 = vadd.f32 %v3155_v27, %v1172_v50  ;;  %v1443_v6 = vmul.f32 %v3165_v39, %v1372_v0  ;;  %v1503_v1 = vsel %vm1490_vm1, %v1430_v5, 0.0 }
 0x1e2   :  { %v1174_v47 = vpop.f32.mrf.mxu1  ;;  %1501 = vadd.xlane.f32.xlu1 %v1500_v9 }
 0x1e3   :  { %v1373_v60 = vmax.f32 %v1173_v8, 0.0  ;;  %v1542_v12 = vsel %vm1490_vm1, %v1443_v6, 0.0  ;;  %v1431_v14 = vmul.f32 %v3165_v39, %v1360_v7 }
 0x1e4   :  { %v1175_v10 = vpop.f32.mrf.mxu1  ;;  %1504 = vadd.xlane.f32.xlu0 %v1503_v1 }
 0x1e5   :  { %v1176_v11 = vadd.f32 %v3155_v27, %v1175_v10  ;;  %v1444_v13 = vmul.f32 %v3165_v39, %v1373_v60  ;;  %v1506_v18 = vsel %vm1490_vm1, %v1431_v14, 0.0 }
 0x1e6   :  { %v1177_v57 = vpop.f32.mrf.mxu1  ;;  %1543 = vadd.xlane.f32.xlu1 %v1542_v12 }
 0x1e7   :  { %v1374_v15 = vmax.f32 %v1176_v11, 0.0  ;;  %v1545_v16 = vsel %vm1490_vm1, %v1444_v13, 0.0 }
 0x1e8   :  { %v1180_v48 = vpop.f32.mrf.mxu1  ;;  %1546 = vadd.xlane.f32.xlu0 %v1545_v16 }
 0x1e9   :  { %v1181_v17 = vadd.f32 %v3155_v27, %v1180_v48  ;;  %v1445_v19 = vmul.f32 %v3165_v39, %v1374_v15 }
 0x1ea   :  { %v1182_v20 = vpop.f32.mrf.mxu1  ;;  %1507 = vadd.xlane.f32.xlu1 %v1506_v18 }
 0x1eb   :  { %v1375_v21 = vmax.f32 %v1181_v17, 0.0  ;;  %v1548_v23 = vsel %vm1490_vm1, %v1445_v19, 0.0 }
 0x1ec   :  { %v1183_v55 = vpop.f32.mrf.mxu1 }
 0x1ed   :  { %v1184_v22 = vadd.f32 %v3155_v27, %v1183_v55  ;;  %v1446_v24 = vmul.f32 %v3165_v39, %v1375_v21 }
 0x1ee   :  { %v1185_v25 = vpop.f32.mrf.mxu1  ;;  %1549 = vadd.xlane.f32.xlu1 %v1548_v23 }
 0x1ef   :  { %v1376_v26 = vmax.f32 %v1184_v22, 0.0  ;;  %v1551_v46 = vsel %vm1490_vm1, %v1446_v24, 0.0 }
 0x1f0   :  { %v1188_v28 = vpop.f32.mrf.mxu1  ;;  %1552 = vadd.xlane.f32.xlu0 %v1551_v46 }
 0x1f1   :  { %v1189_v52 = vadd.f32 %v3155_v27, %v1188_v28  ;;  %v1447_v29 = vmul.f32 %v3165_v39, %v1376_v26 }
 0x1f2   :  { %v1190_v30 = vpop.f32.mrf.mxu1 }
 0x1f3   :  { %v1377_v31 = vmax.f32 %v1189_v52, 0.0  ;;  %v1554_v32 = vsel %vm1490_vm1, %v1447_v29, 0.0 }
 0x1f4   :  { %v1191_v33 = vpop.f32.mrf.mxu1  ;;  %1555 = vadd.xlane.f32.xlu1 %v1554_v32 }
 0x1f5   :  { %v1192_v34 = vadd.f32 %v3155_v27, %v1191_v33  ;;  %v1448_v35 = vmul.f32 %v3165_v39, %v1377_v31 }
 0x1f6   :  { %v1193_v36 = vpop.f32.mrf.mxu1 }
 0x1f7   :  { %v1378_v37 = vmax.f32 %v1192_v34, 0.0  ;;  %v1557_v53 = vsel %vm1490_vm1, %v1448_v35, 0.0 }
 0x1f8   :  { %v1196_v38 = vpop.f32.mrf.mxu1  ;;  %1558 = vadd.xlane.f32.xlu0 %v1557_v53 }
 0x1f9   :  { %v1197_v40 = vadd.f32 %v3155_v27, %v1196_v38  ;;  %v1449_v41 = vmul.f32 %v3165_v39, %v1378_v37 }
 0x1fa   :  { %v1198_v42 = vpop.f32.mrf.mxu1 }
 0x1fb   :  { %v1379_v62 = vmax.f32 %v1197_v40, 0.0  ;;  %v1560_v43 = vsel %vm1490_vm1, %v1449_v41, 0.0 }
 0x1fc   :  { %v1199_v44 = vpop.f32.mrf.mxu1  ;;  %1561 = vadd.xlane.f32.xlu1 %v1560_v43 }
 0x1fd   :  { %v1200_v45 = vadd.f32 %v3155_v27, %v1199_v44  ;;  %v1450_v49 = vmul.f32 %v3165_v39, %v1379_v62 }
 0x1fe   :  { %v1201_v51 = vpop.f32.mrf.mxu1 }
 0x1ff   :  { %v1380_v54 = vmax.f32 %v1200_v45, 0.0  ;;  %v1563_v56 = vsel %vm1490_vm1, %v1450_v49, 0.0 }
 0x200   :  { %v1204_v58 = vpop.f32.mrf.mxu1  ;;  %1564 = vadd.xlane.f32.xlu0 %v1563_v56 }
 0x201   :  { %v1205_v59 = vadd.f32 %v3155_v27, %v1204_v58  ;;  %v1451_v61 = vmul.f32 %v3165_v39, %v1380_v54 }
 0x202   :  { %v1206_v63 = vpop.f32.mrf.mxu1 }
 0x203   :  { %v1381_v0 = vmax.f32 %v1205_v59, 0.0  ;;  %v1566_v2 = vsel %vm1490_vm1, %v1451_v61, 0.0 }
 0x204   :  { %v1207_v3 = vpop.f32.mrf.mxu1  ;;  %1567 = vadd.xlane.f32.xlu1 %v1566_v2 }
 0x205   :  { %v1208_v5 = vadd.f32 %v3155_v27, %v1207_v3  ;;  %v1452_v4 = vmul.f32 %v3165_v39, %v1381_v0 }
 0x206   :  { %v1209_v50 = vpop.f32.mrf.mxu1 }
 0x207   :  { %v1382_v7 = vmax.f32 %v1208_v5, 0.0  ;;  %v1569_v8 = vsel %vm1490_vm1, %v1452_v4, 0.0 }
 0x208   :  { %v1212_v9 = vpop.f32.mrf.mxu1  ;;  %1570 = vadd.xlane.f32.xlu0 %v1569_v8 }
 0x209   :  { %v1213_v6 = vadd.f32 %v3155_v27, %v1212_v9  ;;  %v1453_v47 = vmul.f32 %v3165_v39, %v1382_v7 }
 0x20a   :  { %v1214_v60 = vpop.f32.mrf.mxu1 }
 0x20b   :  { %v1383_v1 = vmax.f32 %v1213_v6, 0.0  ;;  %v1572_v10 = vsel %vm1490_vm1, %v1453_v47, 0.0 }
 0x20c   :  { %v1215_v11 = vpop.f32.mrf.mxu1  ;;  %1573 = vadd.xlane.f32.xlu1 %v1572_v10 }
 0x20d   :  { %v1216_v12 = vadd.f32 %v3155_v27, %v1215_v11  ;;  %v1454_v13 = vmul.f32 %v3165_v39, %v1383_v1 }
 0x20e   :  { %v1217_v14 = vpop.f32.mrf.mxu1 }
 0x20f   :  { %v1384_v57 = vmax.f32 %v1216_v12, 0.0  ;;  %v1575_v15 = vsel %vm1490_vm1, %v1454_v13, 0.0 }
 0x210   :  { %v1220_v16 = vpop.f32.mrf.mxu1  ;;  %1576 = vadd.xlane.f32.xlu0 %v1575_v15 }
 0x211   :  { %v1221_v48 = vadd.f32 %v3155_v27, %v1220_v16  ;;  %v1455_v17 = vmul.f32 %v3165_v39, %v1384_v57 }
 0x212   :  { %v1222_v18 = vpop.f32.mrf.mxu1 }
 0x213   :  { %v1385_v19 = vmax.f32 %v1221_v48, 0.0  ;;  %v1578_v20 = vsel %vm1490_vm1, %v1455_v17, 0.0 }
 0x214   :  { %v1223_v21 = vpop.f32.mrf.mxu1  ;;  %1579 = vadd.xlane.f32.xlu1 %v1578_v20 }
 0x215   :  { %v1224_v55 = vadd.f32 %v3155_v27, %v1223_v21  ;;  %v1456_v22 = vmul.f32 %v3165_v39, %v1385_v19 }
 0x216   :  { %v1225_v23 = vpop.f32.mrf.mxu1 }
 0x217   :  { %v1386_v24 = vmax.f32 %v1224_v55, 0.0  ;;  %v1581_v25 = vsel %vm1490_vm1, %v1456_v22, 0.0 }
 0x218   :  { %v1228_v26 = vpop.f32.mrf.mxu1  ;;  %1582 = vadd.xlane.f32.xlu0 %v1581_v25  ;;  %v3305_v25 = vld [vmem:[#allocation2] ss:$0 sm:$0xff] }
 0x219   :  { %v1229_v46 = vadd.f32 %v3155_v27, %v1228_v26  ;;  %v1457_v28 = vmul.f32 %v3165_v39, %v1386_v24 }
 0x21a   :  { %v1230_v52 = vpop.f32.mrf.mxu1 }
 0x21b   :  { %v1387_v29 = vmax.f32 %v1229_v46, 0.0  ;;  %v1584_v30 = vsel %vm1490_vm1, %v1457_v28, 0.0 }
 0x21c   :  { %v1231_v31 = vpop.f32.mrf.mxu1  ;;  %1585 = vadd.xlane.f32.xlu1 %v1584_v30 }
 0x21d   :  { %v1232_v32 = vadd.f32 %v3155_v27, %v1231_v31  ;;  %v1458_v33 = vmul.f32 %v3165_v39, %v1387_v29 }
 0x21e   :  { %v1233_v34 = vpop.f32.mrf.mxu1 }
 0x21f   :  { %v1388_v35 = vmax.f32 %v1232_v32, 0.0  ;;  %v1587_v36 = vsel %vm1490_vm1, %v1458_v33, 0.0 }
 0x220   :  { %v1236_v37 = vpop.f32.mrf.mxu1  ;;  %1588 = vadd.xlane.f32.xlu0 %v1587_v36 }
 0x221   :  { %v1237_v53 = vadd.f32 %v3155_v27, %v1236_v37  ;;  %v1459_v38 = vmul.f32 %v3165_v39, %v1388_v35 }
 0x222   :  { %v1238_v40 = vpop.f32.mrf.mxu1 }
 0x223   :  { %v1389_v41 = vmax.f32 %v1237_v53, 0.0  ;;  %v1590_v42 = vsel %vm1490_vm1, %v1459_v38, 0.0 }
 0x224   :  { %v1239_v62 = vpop.f32.mrf.mxu1  ;;  %1591 = vadd.xlane.f32.xlu1 %v1590_v42 }
 0x225   :  { %v1240_v43 = vadd.f32 %v3155_v27, %v1239_v62  ;;  %v1460_v44 = vmul.f32 %v3165_v39, %v1389_v41 }
 0x226   :  { %v1241_v45 = vpop.f32.mrf.mxu1 }
 0x227   :  { %v1390_v49 = vmax.f32 %v1240_v43, 0.0  ;;  %v1593_v51 = vsel %vm1490_vm1, %v1460_v44, 0.0 }
 0x228   :  { %v1244_v54 = vpop.f32.mrf.mxu1  ;;  %1594 = vadd.xlane.f32.xlu0 %v1593_v51 }
 0x229   :  { %v1245_v56 = vadd.f32 %v3155_v27, %v1244_v54  ;;  %v1461_v58 = vmul.f32 %v3165_v39, %v1390_v49 }
 0x22a   :  { %v1246_v59 = vpop.f32.mrf.mxu1 }
 0x22b   :  { %v1391_v61 = vmax.f32 %v1245_v56, 0.0  ;;  %v1596_v63 = vsel %vm1490_vm1, %v1461_v58, 0.0 }
 0x22c   :  { %v1247_v0 = vpop.f32.mrf.mxu1  ;;  %1597 = vadd.xlane.f32.xlu1 %v1596_v63 }
 0x22d   :  { %v1248_v2 = vadd.f32 %v3155_v27, %v1247_v0  ;;  %v1462_v3 = vmul.f32 %v3165_v39, %v1391_v61 }
 0x22e   :  { %v1249_v5 = vpop.f32.mrf.mxu1 }
 0x22f   :  { %v1392_v4 = vmax.f32 %v1248_v2, 0.0  ;;  %v1599_v50 = vsel %vm1490_vm1, %v1462_v3, 0.0 }
 0x230   :  { %v1252_v7 = vpop.f32.mrf.mxu1  ;;  %1600 = vadd.xlane.f32.xlu0 %v1599_v50 }
 0x231   :  { %v1253_v8 = vadd.f32 %v3155_v27, %v1252_v7  ;;  %v1463_v9 = vmul.f32 %v3165_v39, %v1392_v4 }
 0x232   :  { %v1254_v6 = vpop.f32.mrf.mxu1 }
 0x233   :  { %v1393_v47 = vmax.f32 %v1253_v8, 0.0  ;;  %v1602_v60 = vsel %vm1490_vm1, %v1463_v9, 0.0 }
 0x234   :  { %v1255_v1 = vpop.f32.mrf.mxu1  ;;  %1603 = vadd.xlane.f32.xlu1 %v1602_v60 }
 0x235   :  { %v1256_v10 = vadd.f32 %v3155_v27, %v1255_v1  ;;  %v1464_v11 = vmul.f32 %v3165_v39, %v1393_v47 }
 0x236   :  { %v1257_v12 = vpop.f32.mrf.mxu1 }
 0x237   :  { %v1394_v13 = vmax.f32 %v1256_v10, 0.0  ;;  %v1605_v14 = vsel %vm1490_vm1, %v1464_v11, 0.0 }
 0x238   :  { %v1260_v57 = vpop.f32.mrf.mxu1  ;;  %1606 = vadd.xlane.f32.xlu0 %v1605_v14 }
 0x239   :  { %v1261_v15 = vadd.f32 %v3155_v27, %v1260_v57  ;;  %v1465_v16 = vmul.f32 %v3165_v39, %v1394_v13 }
 0x23a   :  { %v1262_v48 = vpop.f32.mrf.mxu1 }
 0x23b   :  { %v1395_v17 = vmax.f32 %v1261_v15, 0.0  ;;  %v1608_v18 = vsel %vm1490_vm1, %v1465_v16, 0.0 }
 0x23c   :  { %v1263_v19 = vpop.f32.mrf.mxu1  ;;  %1609 = vadd.xlane.f32.xlu1 %v1608_v18 }
 0x23d   :  { %v1264_v20 = vadd.f32 %v3155_v27, %v1263_v19  ;;  %v1466_v21 = vmul.f32 %v3165_v39, %v1395_v17 }
 0x23e   :  { %v1265_v55 = vpop.f32.mrf.mxu1 }
 0x23f   :  { %v1396_v22 = vmax.f32 %v1264_v20, 0.0  ;;  %v1611_v23 = vsel %vm1490_vm1, %v1466_v21, 0.0 }
 0x240   :  { %v1268_v24 = vpop.f32.mrf.mxu1  ;;  %1612 = vadd.xlane.f32.xlu0 %v1611_v23 }
 0x241   :  { %v1269_v26 = vadd.f32 %v3155_v27, %v1268_v24  ;;  %v1467_v46 = vmul.f32 %v3165_v39, %v1396_v22  ;;  %v1511_v28 = vpop.xlane.xlu0 %1510 }
 0x242   :  { %v1270_v52 = vpop.f32.mrf.mxu1  ;;  %v1696_v30 = vadd.f32 %v3305_v25, %v1511_v28 }
 0x243   :  { %v1397_v29 = vmax.f32 %v1269_v26, 0.0  ;;  %v1614_v31 = vsel %vm1490_vm1, %v1467_v46, 0.0 }
 0x244   :  { %v1271_v32 = vpop.f32.mrf.mxu1  ;;  %1615 = vadd.xlane.f32.xlu1 %v1614_v31  ;;  %v2300_v33 = vmul.f32 -1.442695, %v1696_v30 }
 0x245   :  { %v1272_v34 = vadd.f32 %v3155_v27, %v1271_v32  ;;  %v1468_v35 = vmul.f32 %v3165_v39, %v1397_v29  ;;  %v1514_v36 = vpop.xlane.xlu1 %1513 }
 0x246   :  { %v1273_v37 = vpop.f32.mrf.mxu1  ;;  %2445 = vpow2.f32 %v2300_v33  ;;  %v1697_v38 = vadd.f32 %v3305_v25, %v1514_v36 }
 0x247   :  { %v1398_v53 = vmax.f32 %v1272_v34, 0.0  ;;  %v1617_v40 = vsel %vm1490_vm1, %v1468_v35, 0.0 }
 0x248   :  { %v1276_v41 = vpop.f32.mrf.mxu1  ;;  %1618 = vadd.xlane.f32.xlu0 %v1617_v40  ;;  %v2301_v42 = vmul.f32 -1.442695, %v1697_v38 }
 0x249   :  { %v1277_v62 = vadd.f32 %v3155_v27, %v1276_v41  ;;  %v1469_v43 = vmul.f32 %v3165_v39, %v1398_v53  ;;  %v1517_v44 = vpop.xlane.xlu0 %1516 }
 0x24a   :  { %v1278_v45 = vpop.f32.mrf.mxu1  ;;  %2447 = vpow2.f32 %v2301_v42  ;;  %v1698_v51 = vadd.f32 %v3305_v25, %v1517_v44 }
 0x24b   :  { %v1399_v49 = vmax.f32 %v1277_v62, 0.0  ;;  %v1620_v54 = vsel %vm1490_vm1, %v1469_v43, 0.0 }
 0x24c   :  { %v1279_v56 = vpop.f32.mrf.mxu1  ;;  %1621 = vadd.xlane.f32.xlu1 %v1620_v54  ;;  %v2302_v58 = vmul.f32 -1.442695, %v1698_v51 }
 0x24d   :  { %v1280_v59 = vadd.f32 %v3155_v27, %v1279_v56  ;;  %v1470_v61 = vmul.f32 %v3165_v39, %v1399_v49  ;;  %v1520_v63 = vpop.xlane.xlu1 %1519 }
 0x24e   :  { %v1281_v0 = vpop.f32.mrf.mxu1  ;;  %2449 = vpow2.f32 %v2302_v58  ;;  %v1699_v3 = vadd.f32 %v3305_v25, %v1520_v63 }
 0x24f   :  { %v1400_v2 = vmax.f32 %v1280_v59, 0.0  ;;  %v1623_v5 = vsel %vm1490_vm1, %v1470_v61, 0.0 }
 0x250   :  { %v1284_v4 = vpop.f32.mrf.mxu1  ;;  %1624 = vadd.xlane.f32.xlu0 %v1623_v5  ;;  %v2303_v50 = vmul.f32 -1.442695, %v1699_v3 }
 0x251   :  { %v1285_v7 = vadd.f32 %v3155_v27, %v1284_v4  ;;  %v1471_v8 = vmul.f32 %v3165_v39, %v1400_v2  ;;  %v1523_v9 = vpop.xlane.xlu0 %1522 }
 0x252   :  { %v1286_v6 = vpop.f32.mrf.mxu1  ;;  %2451 = vpow2.f32 %v2303_v50  ;;  %v1700_v60 = vadd.f32 %v3305_v25, %v1523_v9 }
 0x253   :  { %v1401_v47 = vmax.f32 %v1285_v7, 0.0  ;;  %v1626_v1 = vsel %vm1490_vm1, %v1471_v8, 0.0  ;;  %v2446_v10 = vpop.eup %2445 }
 0x254   :  { %v1287_v11 = vpop.f32.mrf.mxu1  ;;  %1627 = vadd.xlane.f32.xlu1 %v1626_v1  ;;  %v1952_v12 = vadd.f32 1.0, %v2446_v10  ;;  %v2304_v13 = vmul.f32 -1.442695, %v1700_v60 }
 0x255   :  { %v1288_v14 = vadd.f32 %v3155_v27, %v1287_v11  ;;  %v1472_v57 = vmul.f32 %v3165_v39, %v1401_v47  ;;  %v1526_v15 = vpop.xlane.xlu1 %1525 }
 0x256   :  { %v1289_v16 = vpop.f32.mrf.mxu1  ;;  %2453 = vrcp.f32 %v1952_v12  ;;  %v1701_v17 = vadd.f32 %v3305_v25, %v1526_v15 }
 0x257   :  { %v1402_v48 = vmax.f32 %v1288_v14, 0.0  ;;  %v1629_v18 = vsel %vm1490_vm1, %v1472_v57, 0.0  ;;  %v2448_v19 = vpop.eup %2447  ;;  %2455 = vpow2.f32 %v2304_v13 }
 0x258   :  { %v1292_v20 = vpop.f32.mrf.mxu1  ;;  %1630 = vadd.xlane.f32.xlu0 %v1629_v18  ;;  %v1953_v21 = vadd.f32 1.0, %v2448_v19  ;;  %v2305_v55 = vmul.f32 -1.442695, %v1701_v17 }
 0x259   :  { %v1293_v22 = vadd.f32 %v3155_v27, %v1292_v20  ;;  %v1529_v23 = vpop.xlane.xlu0 %1528  ;;  %v1473_v24 = vmul.f32 %v3165_v39, %v1402_v48 }
 0x25a   :  { %v1702_v26 = vadd.f32 %v3305_v25, %v1529_v23  ;;  %v1294_v46 = vpop.f32.mrf.mxu1  ;;  %2457 = vrcp.f32 %v1953_v21 }
 0x25b   :  { %v1403_v28 = vmax.f32 %v1293_v22, 0.0  ;;  %v1632_v52 = vsel %vm1490_vm1, %v1473_v24, 0.0  ;;  %v2450_v29 = vpop.eup %2449  ;;  %2459 = vpow2.f32 %v2305_v55 }
 0x25c   :  { %v2306_v30 = vmul.f32 -1.442695, %v1702_v26  ;;  %v1295_v31 = vpop.f32.mrf.mxu1  ;;  %1633 = vadd.xlane.f32.xlu1 %v1632_v52  ;;  %v1954_v32 = vadd.f32 1.0, %v2450_v29  ;;  %v3370_v29 = vld [vmem:[%s3711_s4] ss:$0 sm:$0xff] }
 0x25d   :  { %v1296_v33 = vadd.f32 %v3155_v27, %v1295_v31  ;;  %v1532_v34 = vpop.xlane.xlu1 %1531  ;;  %v1493_v35 = vpop.xlane.xlu0 %1492  ;;  %v1474_v36 = vmul.f32 %v3165_v39, %v1403_v28 }
 0x25e   :  { %2461 = vpow2.f32 %v2306_v30  ;;  %v1703_v37 = vadd.f32 %v3305_v25, %v1532_v34  ;;  %v1690_v53 = vadd.f32 %v3305_v25, %v1493_v35  ;;  %v1297_v38 = vpop.f32.mrf.mxu1 }
 0x25f   :  { %2463 = vrcp.f32 %v1954_v32  ;;  %v1404_v40 = vmax.f32 %v1296_v33, 0.0  ;;  %v1635_v41 = vsel %vm1490_vm1, %v1474_v36, 0.0  ;;  %v2452_v42 = vpop.eup %2451 }
 0x260   :  { %v2307_v62 = vmul.f32 -1.442695, %v1703_v37  ;;  %v2294_v43 = vmul.f32 -1.442695, %v1690_v53  ;;  %v1300_v44 = vpop.f32.mrf.mxu1  ;;  %1636 = vadd.xlane.f32.xlu0 %v1635_v41  ;;  %v1955_v45 = vadd.f32 1.0, %v2452_v42 }
 0x261   :  { %v1301_v49 = vadd.f32 %v3155_v27, %v1300_v44  ;;  %v1496_v51 = vpop.xlane.xlu0 %1495  ;;  %v1475_v54 = vmul.f32 %v3165_v39, %v1404_v40 }
 0x262   :  { %2465 = vpow2.f32 %v2307_v62  ;;  %v1691_v56 = vadd.f32 %v3305_v25, %v1496_v51  ;;  %v1302_v58 = vpop.f32.mrf.mxu1 }
 0x263   :  { %2467 = vrcp.f32 %v1955_v45  ;;  %v1405_v59 = vmax.f32 %v1301_v49, 0.0  ;;  %v1499_v61 = vpop.xlane.xlu1 %1498  ;;  %v1638_v63 = vsel %vm1490_vm1, %v1475_v54, 0.0  ;;  %v2454_v0 = vpop.eup %2453  ;;  %v3385_v49 = vld [vmem:[%s3712_s5] ss:$0 sm:$0xff] }
 0x264   :  { %2469 = vpow2.f32 %v2294_v43  ;;  %v2295_v2 = vmul.f32 -1.442695, %v1691_v56  ;;  %v1692_v3 = vadd.f32 %v3305_v25, %v1499_v61  ;;  %v1303_v5 = vpop.f32.mrf.mxu1  ;;  %1639 = vadd.xlane.f32.xlu1 %v1638_v63  ;;  %v2456_v4 = vpop.eup %2455  ;;  %2145 = vst.msk [vmem:[%s3714_s7 + $0x30] sm:$0xff] %vm2138_vm2, %v2454_v0 }
 0x265   :  { %v1304_v50 = vadd.f32 %v3155_v27, %v1303_v5  ;;  %v1535_v7 = vpop.xlane.xlu0 %1534  ;;  %v1476_v8 = vmul.f32 %v3165_v39, %v1405_v59  ;;  %v1956_v9 = vadd.f32 1.0, %v2456_v4 }
 0x266   :  { %2471 = vpow2.f32 %v2295_v2  ;;  %v2296_v6 = vmul.f32 -1.442695, %v1692_v3  ;;  %v1704_v47 = vadd.f32 %v3305_v25, %v1535_v7  ;;  %v1305_v60 = vpop.f32.mrf.mxu1 }
 0x267   :  { %v1406_v1 = vmax.f32 %v1304_v50, 0.0  ;;  %v1538_v10 = vpop.xlane.xlu1 %1537  ;;  %v1641_v11 = vsel %vm1490_vm1, %v1476_v8, 0.0  ;;  %v2458_v12 = vpop.eup %2457  ;;  %2473 = vrcp.f32 %v1956_v9 }
 0x268   :  { %v2308_v13 = vmul.f32 -1.442695, %v1704_v47  ;;  %v1705_v14 = vadd.f32 %v3305_v25, %v1538_v10  ;;  %v1308_v57 = vpop.f32.mrf.mxu1  ;;  %1642 = vadd.xlane.f32.xlu0 %v1641_v11  ;;  %v2460_v15 = vpop.eup %2459  ;;  %2146 = vst.msk [vmem:[%s3714_s7 + $0x38] sm:$0xff] %vm2138_vm2, %v2458_v12  ;;  %2475 = vpow2.f32 %v2296_v6 }
 0x269   :  { %v1309_v16 = vadd.f32 %v3155_v27, %v1308_v57  ;;  %v1541_v48 = vpop.xlane.xlu0 %1540  ;;  %v1477_v17 = vmul.f32 %v3165_v39, %v1406_v1  ;;  %v1957_v18 = vadd.f32 1.0, %v2460_v15 }
 0x26a   :  { %2477 = vpow2.f32 %v2308_v13  ;;  %v2309_v19 = vmul.f32 -1.442695, %v1705_v14  ;;  %v1706_v20 = vadd.f32 %v3305_v25, %v1541_v48  ;;  %v1310_v21 = vpop.f32.mrf.mxu1 }
 0x26b   :  { %v2462_v55 = vpop.eup %2461  ;;  %v1407_v22 = vmax.f32 %v1309_v16, 0.0  ;;  %v1502_v23 = vpop.xlane.xlu1 %1501  ;;  %v1644_v24 = vsel %vm1490_vm1, %v1477_v17, 0.0  ;;  %2479 = vrcp.f32 %v1957_v18 }
 0x26c   :  { %v2464_v26 = vpop.eup %2463  ;;  %v1958_v46 = vadd.f32 1.0, %v2462_v55  ;;  %v2310_v28 = vmul.f32 -1.442695, %v1706_v20  ;;  %v1693_v27 = vadd.f32 %v3305_v25, %v1502_v23  ;;  %v1311_v52 = vpop.f32.mrf.mxu1  ;;  %1645 = vadd.xlane.f32.xlu1 %v1644_v24  ;;  %2481 = vpow2.f32 %v2309_v19 }
 0x26d   :  { %2147 = vst.msk [vmem:[%s3714_s7 + $0x40] sm:$0xff] %vm2138_vm2, %v2464_v26  ;;  %v1312_v30 = vadd.f32 %v3370_v29, %v1311_v52  ;;  %v1505_v31 = vpop.xlane.xlu0 %1504  ;;  %v1478_v32 = vmul.f32 %v3165_v39, %v1407_v22 }
 0x26e   :  { %2483 = vrcp.f32 %v1958_v46  ;;  %v2297_v33 = vmul.f32 -1.442695, %v1693_v27  ;;  %v1694_v34 = vadd.f32 %v3305_v25, %v1505_v31  ;;  %v1313_v35 = vpop.f32.mrf.mxu1 }
 0x26f   :  { %v2466_v36 = vpop.eup %2465  ;;  %2485 = vpow2.f32 %v2310_v28  ;;  %v1408_v37 = vmax.f32 %v1312_v30, 0.0  ;;  %v1544_v53 = vpop.xlane.xlu1 %1543  ;;  %v1647_v38 = vsel %vm1490_vm1, %v1478_v32, 0.0 }
 0x270   :  { %v2468_v40 = vpop.eup %2467  ;;  %v1959_v41 = vadd.f32 1.0, %v2466_v36  ;;  %2487 = vpow2.f32 %v2297_v33  ;;  %v2298_v42 = vmul.f32 -1.442695, %v1694_v34  ;;  %v1707_v62 = vadd.f32 %v3305_v25, %v1544_v53  ;;  %v1316_v43 = vpop.f32.mrf.mxu1  ;;  %1648 = vadd.xlane.f32.xlu0 %v1647_v38 }
 0x271   :  { %v2470_v39 = vpop.eup %2469  ;;  %2148 = vst.msk [vmem:[%s3714_s7 + $0x48] sm:$0xff] %vm2138_vm2, %v2468_v40  ;;  %v1317_v44 = vadd.f32 %v3370_v29, %v1316_v43  ;;  %v1547_v45 = vpop.xlane.xlu0 %1546  ;;  %v1479_v51 = vmul.f32 %v3385_v49, %v1408_v37 }
 0x272   :  { %2489 = vrcp.f32 %v1959_v41  ;;  %v1946_v54 = vadd.f32 1.0, %v2470_v39  ;;  %v2311_v56 = vmul.f32 -1.442695, %v1707_v62  ;;  %v1708_v58 = vadd.f32 %v3305_v25, %v1547_v45  ;;  %v1318_v59 = vpop.f32.mrf.mxu1 }
 0x273   :  { %v2472_v61 = vpop.eup %2471  ;;  %2491 = vpow2.f32 %v2298_v42  ;;  %v1409_v63 = vmax.f32 %v1317_v44, 0.0  ;;  %v1508_v0 = vpop.xlane.xlu1 %1507  ;;  %v1650_v2 = vsel %vm1490_vm1, %v1479_v51, 0.0 }
 0x274   :  { %2493 = vrcp.f32 %v1946_v54  ;;  %v1947_v3 = vadd.f32 1.0, %v2472_v61  ;;  %v2312_v5 = vmul.f32 -1.442695, %v1708_v58  ;;  %v1695_v4 = vadd.f32 %v3305_v25, %v1508_v0  ;;  %v1319_v50 = vpop.f32.mrf.mxu1  ;;  %1651 = vadd.xlane.f32.xlu1 %v1650_v2  ;;  %v2474_v7 = vpop.eup %2473 }
 0x275   :  { %2495 = vpow2.f32 %v2311_v56  ;;  %v1320_v8 = vadd.f32 %v3370_v29, %v1319_v50  ;;  %v1480_v9 = vmul.f32 %v3385_v49, %v1409_v63  ;;  %v2476_v6 = vpop.eup %2475  ;;  %2149 = vst.msk [vmem:[%s3714_s7 + $0x50] sm:$0xff] %vm2138_vm2, %v2474_v7 }
 0x276   :  { %2497 = vrcp.f32 %v1947_v3  ;;  %v2299_v47 = vmul.f32 -1.442695, %v1695_v4  ;;  %v1321_v60 = vpop.f32.mrf.mxu1  ;;  %v1948_v10 = vadd.f32 1.0, %v2476_v6 }
 0x277   :  { %v2478_v1 = vpop.eup %2477  ;;  %2499 = vpow2.f32 %v2312_v5  ;;  %v1410_v11 = vmax.f32 %v1320_v8, 0.0  ;;  %v1550_v12 = vpop.xlane.xlu1 %1549  ;;  %v1653_v13 = vsel %vm1490_vm1, %v1480_v9, 0.0 }
 0x278   :  { %v1960_v14 = vadd.f32 1.0, %v2478_v1  ;;  %2501 = vpow2.f32 %v2299_v47  ;;  %v1709_v57 = vadd.f32 %v3305_v25, %v1550_v12  ;;  %v1324_v15 = vpop.f32.mrf.mxu1  ;;  %1654 = vadd.xlane.f32.xlu0 %v1653_v13  ;;  %v2480_v16 = vpop.eup %2479 }
 0x279   :  { %2503 = vrcp.f32 %v1948_v10  ;;  %v1325_v48 = vadd.f32 %v3370_v29, %v1324_v15  ;;  %v1553_v17 = vpop.xlane.xlu0 %1552  ;;  %v1481_v18 = vmul.f32 %v3385_v49, %v1410_v11  ;;  %v2482_v19 = vpop.eup %2481  ;;  %2150 = vst.msk [vmem:[%s3714_s7 + $0x58] sm:$0xff] %vm2138_vm2, %v2480_v16 }
 0x27a   :  { %2505 = vrcp.f32 %v1960_v14  ;;  %v2313_v20 = vmul.f32 -1.442695, %v1709_v57  ;;  %v1710_v21 = vadd.f32 %v3305_v25, %v1553_v17  ;;  %v1326_v55 = vpop.f32.mrf.mxu1  ;;  %v1961_v23 = vadd.f32 1.0, %v2482_v19 }
 0x27b   :  { %v2484_v22 = vpop.eup %2483  ;;  %v1411_v24 = vmax.f32 %v1325_v48, 0.0  ;;  %v1656_v26 = vsel %vm1490_vm1, %v1481_v18, 0.0 }
 0x27c   :  { %v2486_v46 = vpop.eup %2485  ;;  %2151 = vst.msk [vmem:[%s3714_s7 + $0x60] sm:$0xff] %vm2138_vm2, %v2484_v22  ;;  %2507 = vpow2.f32 %v2313_v20  ;;  %v2314_v28 = vmul.f32 -1.442695, %v1710_v21  ;;  %v1327_v27 = vpop.f32.mrf.mxu1  ;;  %1657 = vadd.xlane.f32.xlu1 %v1656_v26 }
 0x27d   :  { %v2488_v52 = vpop.eup %2487  ;;  %2509 = vrcp.f32 %v1961_v23  ;;  %v1962_v30 = vadd.f32 1.0, %v2486_v46  ;;  %v1328_v31 = vadd.f32 %v3370_v29, %v1327_v27  ;;  %v1556_v32 = vpop.xlane.xlu1 %1555  ;;  %v1482_v33 = vmul.f32 %v3385_v49, %v1411_v24 }
 0x27e   :  { %v1949_v34 = vadd.f32 1.0, %v2488_v52  ;;  %2511 = vpow2.f32 %v2314_v28  ;;  %v1711_v35 = vadd.f32 %v3305_v25, %v1556_v32  ;;  %v1329_v36 = vpop.f32.mrf.mxu1 }
 0x27f   :  { %v2490_v37 = vpop.eup %2489  ;;  %2513 = vrcp.f32 %v1962_v30  ;;  %v1412_v53 = vmax.f32 %v1328_v31, 0.0  ;;  %v1659_v38 = vsel %vm1490_vm1, %v1482_v33, 0.0 }
 0x280   :  { %v2492_v40 = vpop.eup %2491  ;;  %2152 = vst.msk [vmem:[%s3714_s7 + $0x68] sm:$0xff] %vm2138_vm2, %v2490_v37  ;;  %2515 = vrcp.f32 %v1949_v34  ;;  %v2315_v41 = vmul.f32 -1.442695, %v1711_v35  ;;  %v1332_v42 = vpop.f32.mrf.mxu1  ;;  %1660 = vadd.xlane.f32.xlu0 %v1659_v38 }
 0x281   :  { %v2494_v62 = vpop.eup %2493  ;;  %v1950_v43 = vadd.f32 1.0, %v2492_v40  ;;  %v1333_v39 = vadd.f32 %v3370_v29, %v1332_v42  ;;  %v1559_v44 = vpop.xlane.xlu0 %1558  ;;  %v1483_v45 = vmul.f32 %v3385_v49, %v1412_v53 }
 0x282   :  { %v2496_v51 = vpop.eup %2495  ;;  %2139 = vst.msk [vmem:[%s3714_s7] sm:$0xff] %vm2138_vm2, %v2494_v62  ;;  %2517 = vpow2.f32 %v2315_v41  ;;  %v1712_v54 = vadd.f32 %v3305_v25, %v1559_v44  ;;  %v1334_v56 = vpop.f32.mrf.mxu1 }
 0x283   :  { %v2498_v58 = vpop.eup %2497  ;;  %2519 = vrcp.f32 %v1950_v43  ;;  %v1963_v59 = vadd.f32 1.0, %v2496_v51  ;;  %v1413_v61 = vmax.f32 %v1333_v39, 0.0  ;;  %v1662_v63 = vsel %vm1490_vm1, %v1483_v45, 0.0 }
 0x284   :  { %v2500_v0 = vpop.eup %2499  ;;  %2140 = vst.msk [vmem:[%s3714_s7 + $0x8] sm:$0xff] %vm2138_vm2, %v2498_v58  ;;  %v2316_v2 = vmul.f32 -1.442695, %v1712_v54  ;;  %v1335_v3 = vpop.f32.mrf.mxu1  ;;  %1663 = vadd.xlane.f32.xlu1 %v1662_v63 }
 0x285   :  { %v2502_v5 = vpop.eup %2501  ;;  %2521 = vrcp.f32 %v1963_v59  ;;  %v1964_v4 = vadd.f32 1.0, %v2500_v0  ;;  %v1336_v50 = vadd.f32 %v3370_v29, %v1335_v3  ;;  %v1562_v7 = vpop.xlane.xlu1 %1561  ;;  %v1484_v8 = vmul.f32 %v3385_v49, %v1413_v61 }
 0x286   :  { %v2504_v9 = vpop.eup %2503  ;;  %v1951_v6 = vadd.f32 1.0, %v2502_v5  ;;  %2523 = vpow2.f32 %v2316_v2  ;;  %v1713_v47 = vadd.f32 %v3305_v25, %v1562_v7  ;;  %v1337_v60 = vpop.f32.mrf.mxu1 }
 0x287   :  { %v2506_v1 = vpop.eup %2505  ;;  %2141 = vst.msk [vmem:[%s3714_s7 + $0x10] sm:$0xff] %vm2138_vm2, %v2504_v9  ;;  %2525 = vrcp.f32 %v1964_v4  ;;  %v1414_v10 = vmax.f32 %v1336_v50, 0.0  ;;  %v1665_v11 = vsel %vm1490_vm1, %v1484_v8, 0.0 }
 0x288   :  { %2153 = vst.msk [vmem:[%s3714_s7 + $0x70] sm:$0xff] %vm2138_vm2, %v2506_v1  ;;  %2527 = vrcp.f32 %v1951_v6  ;;  %v2317_v12 = vmul.f32 -1.442695, %v1713_v47  ;;  %v1340_v13 = vpop.f32.mrf.mxu1  ;;  %1666 = vadd.xlane.f32.xlu0 %v1665_v11 }
 0x289   :  { %v2508_v14 = vpop.eup %2507  ;;  %v1341_v57 = vadd.f32 %v3370_v29, %v1340_v13  ;;  %v1565_v15 = vpop.xlane.xlu0 %1564  ;;  %v1485_v16 = vmul.f32 %v3385_v49, %v1414_v10 }
 0x28a   :  { %v2510_v48 = vpop.eup %2509  ;;  %v1965_v17 = vadd.f32 1.0, %v2508_v14  ;;  %2529 = vpow2.f32 %v2317_v12  ;;  %v1714_v18 = vadd.f32 %v3305_v25, %v1565_v15  ;;  %v1342_v19 = vpop.f32.mrf.mxu1 }
 0x28b   :  { %v2512_v20 = vpop.eup %2511  ;;  %2154 = vst.msk [vmem:[%s3714_s7 + $0x78] sm:$0xff] %vm2138_vm2, %v2510_v48  ;;  %v1415_v21 = vmax.f32 %v1341_v57, 0.0  ;;  %v1668_v55 = vsel %vm1490_vm1, %v1485_v16, 0.0 }
 0x28c   :  { %v2514_v22 = vpop.eup %2513  ;;  %2531 = vrcp.f32 %v1965_v17  ;;  %v1966_v23 = vadd.f32 1.0, %v2512_v20  ;;  %v2318_v24 = vmul.f32 -1.442695, %v1714_v18  ;;  %v1343_v26 = vpop.f32.mrf.mxu1  ;;  %1669 = vadd.xlane.f32.xlu1 %v1668_v55 }
 0x28d   :  { %v2516_v46 = vpop.eup %2515  ;;  %2155 = vst.msk [vmem:[%s3714_s7 + $0x80] sm:$0xff] %vm2138_vm2, %v2514_v22  ;;  %v1344_v28 = vadd.f32 %v3370_v29, %v1343_v26  ;;  %v1568_v27 = vpop.xlane.xlu1 %1567  ;;  %v1486_v52 = vmul.f32 %v3385_v49, %v1415_v21 }
 0x28e   :  { %2142 = vst.msk [vmem:[%s3714_s7 + $0x18] sm:$0xff] %vm2138_vm2, %v2516_v46  ;;  %2533 = vrcp.f32 %v1966_v23  ;;  %v1715_v30 = vadd.f32 %v3305_v25, %v1568_v27  ;;  %v1345_v31 = vpop.f32.mrf.mxu1 }
 0x28f   :  { %v2518_v32 = vpop.eup %2517  ;;  %2535 = vpow2.f32 %v2318_v24  ;;  %v1416_v33 = vmax.f32 %v1344_v28, 0.0  ;;  %v1671_v34 = vsel %vm1490_vm1, %v1486_v52, 0.0 }
 0x290   :  { %v2520_v35 = vpop.eup %2519  ;;  %v1967_v36 = vadd.f32 1.0, %v2518_v32  ;;  %v2319_v37 = vmul.f32 -1.442695, %v1715_v30  ;;  %v1348_v53 = vpop.f32.mrf.mxu1  ;;  %1672 = vadd.xlane.f32.xlu0 %v1671_v34 }
 0x291   :  { %2143 = vst.msk [vmem:[%s3714_s7 + $0x20] sm:$0xff] %vm2138_vm2, %v2520_v35  ;;  %v1349_v38 = vadd.f32 %v3370_v29, %v1348_v53  ;;  %v1571_v40 = vpop.xlane.xlu0 %1570  ;;  %v1487_v41 = vmul.f32 %v3385_v49, %v1416_v33 }
 0x292   :  { %v2522_v42 = vpop.eup %2521  ;;  %2537 = vrcp.f32 %v1967_v36  ;;  %v1716_v62 = vadd.f32 %v3305_v25, %v1571_v40  ;;  %v1350_v43 = vpop.f32.mrf.mxu1 }
 0x293   :  { %v2524_v39 = vpop.eup %2523  ;;  %2156 = vst.msk [vmem:[%s3714_s7 + $0x88] sm:$0xff] %vm2138_vm2, %v2522_v42  ;;  %2539 = vpow2.f32 %v2319_v37  ;;  %v1417_v44 = vmax.f32 %v1349_v38, 0.0  ;;  %v1674_v45 = vsel %vm1490_vm1, %v1487_v41, 0.0 }
 0x294   :  { %v2526_v51 = vpop.eup %2525  ;;  %v1968_v54 = vadd.f32 1.0, %v2524_v39  ;;  %v2320_v56 = vmul.f32 -1.442695, %v1716_v62  ;;  %v1351_v58 = vpop.f32.mrf.mxu1  ;;  %1675 = vadd.xlane.f32.xlu1 %v1674_v45 }
 0x295   :  { %v2528_v59 = vpop.eup %2527  ;;  %2157 = vst.msk [vmem:[%s3714_s7 + $0x90] sm:$0xff] %vm2138_vm2, %v2526_v51  ;;  %v1352_v61 = vadd.f32 %v3370_v29, %v1351_v58  ;;  %v1574_v63 = vpop.xlane.xlu1 %1573  ;;  %v1488_v0 = vmul.f32 %v3385_v49, %v1417_v44 }
 0x296   :  { %2144 = vst.msk [vmem:[%s3714_s7 + $0x28] sm:$0xff] %vm2138_vm2, %v2528_v59  ;;  %2541 = vrcp.f32 %v1968_v54  ;;  %v1717_v2 = vadd.f32 %v3305_v25, %v1574_v63  ;;  %v1353_v3 = vpop.f32.mrf.mxu1 }
 0x297   :  { %v2530_v5 = vpop.eup %2529  ;;  %2543 = vpow2.f32 %v2320_v56  ;;  %v1418_v4 = vmax.f32 %v1352_v61, 0.0  ;;  %v1677_v50 = vsel %vm1490_vm1, %v1488_v0, 0.0 }
 0x298   :  { %v1969_v7 = vadd.f32 1.0, %v2530_v5  ;;  %v2321_v8 = vmul.f32 -1.442695, %v1717_v2  ;;  %1678 = vadd.xlane.f32.xlu0 %v1677_v50 }
 0x299   :  { %v2532_v29 = vpop.eup %2531  ;;  %v1577_v9 = vpop.xlane.xlu0 %1576  ;;  %v1489_v6 = vmul.f32 %v3385_v49, %v1418_v4 }
 0x29a   :  { %2158 = vst.msk [vmem:[%s3714_s7 + $0x98] sm:$0xff] %vm2138_vm2, %v2532_v29  ;;  %2545 = vrcp.f32 %v1969_v7  ;;  %v1718_v47 = vadd.f32 %v3305_v25, %v1577_v9 }
 0x29b   :  { %v2534_v60 = vpop.eup %2533  ;;  %2547 = vpow2.f32 %v2321_v8  ;;  %v1680_v1 = vsel %vm1490_vm1, %v1489_v6, 0.0 }
 0x29c   :  { %v2536_v10 = vpop.eup %2535  ;;  %2159 = vst.msk [vmem:[%s3714_s7 + $0xa0] sm:$0xff] %vm2138_vm2, %v2534_v60  ;;  %v2322_v11 = vmul.f32 -1.442695, %v1718_v47  ;;  %1681 = vadd.xlane.f32.xlu1 %v1680_v1 }
 0x29d   :  { %v1970_v49 = vadd.f32 1.0, %v2536_v10  ;;  %v1580_v12 = vpop.xlane.xlu1 %1579 }
 0x29e   :  { %2549 = vpow2.f32 %v2322_v11  ;;  %v1719_v13 = vadd.f32 %v3305_v25, %v1580_v12 }
 0x29f   :  { %v2538_v14 = vpop.eup %2537  ;;  %2551 = vrcp.f32 %v1970_v49 }
 0x2a0   :  { %v2540_v57 = vpop.eup %2539  ;;  %2160 = vst.msk [vmem:[%s3714_s7 + $0xa8] sm:$0xff] %vm2138_vm2, %v2538_v14  ;;  %v2323_v15 = vmul.f32 -1.442695, %v1719_v13 }
 0x2a1   :  { %v1971_v16 = vadd.f32 1.0, %v2540_v57  ;;  %v1583_v48 = vpop.xlane.xlu0 %1582 }
 0x2a2   :  { %2553 = vpow2.f32 %v2323_v15  ;;  %v1720_v17 = vadd.f32 %v3305_v25, %v1583_v48 }
 0x2a3   :  { %v2542_v18 = vpop.eup %2541  ;;  %2555 = vrcp.f32 %v1971_v16 }
 0x2a4   :  { %v2544_v19 = vpop.eup %2543  ;;  %2161 = vst.msk [vmem:[%s3714_s7 + $0xb0] sm:$0xff] %vm2138_vm2, %v2542_v18  ;;  %v2324_v20 = vmul.f32 -1.442695, %v1720_v17 }
 0x2a5   :  { %v1972_v21 = vadd.f32 1.0, %v2544_v19  ;;  %v1586_v55 = vpop.xlane.xlu1 %1585 }
 0x2a6   :  { %2557 = vpow2.f32 %v2324_v20  ;;  %v1721_v22 = vadd.f32 %v3305_v25, %v1586_v55 }
 0x2a7   :  { %v2546_v23 = vpop.eup %2545  ;;  %2559 = vrcp.f32 %v1972_v21 }
 0x2a8   :  { %v2548_v24 = vpop.eup %2547  ;;  %2162 = vst.msk [vmem:[%s3714_s7 + $0xb8] sm:$0xff] %vm2138_vm2, %v2546_v23  ;;  %v2325_v26 = vmul.f32 -1.442695, %v1721_v22 }
 0x2a9   :  { %v1973_v46 = vadd.f32 1.0, %v2548_v24  ;;  %v1589_v28 = vpop.xlane.xlu0 %1588 }
 0x2aa   :  { %2561 = vpow2.f32 %v2325_v26  ;;  %v1722_v27 = vadd.f32 %v3305_v25, %v1589_v28 }
 0x2ab   :  { %v2550_v52 = vpop.eup %2549  ;;  %2563 = vrcp.f32 %v1973_v46 }
 0x2ac   :  { %v2552_v30 = vpop.eup %2551  ;;  %v1974_v31 = vadd.f32 1.0, %v2550_v52  ;;  %v2326_v32 = vmul.f32 -1.442695, %v1722_v27 }
 0x2ad   :  { %2163 = vst.msk [vmem:[%s3714_s7 + $0xc0] sm:$0xff] %vm2138_vm2, %v2552_v30  ;;  %v1592_v33 = vpop.xlane.xlu1 %1591 }
 0x2ae   :  { %2565 = vrcp.f32 %v1974_v31  ;;  %v1723_v34 = vadd.f32 %v3305_v25, %v1592_v33  ;;  %v3568_v31 = vld [vmem:[#allocation2] ss:$0 sm:$0xff] }
 0x2af   :  { %v2554_v35 = vpop.eup %2553  ;;  %2567 = vpow2.f32 %v2326_v32 }
 0x2b0   :  { %v2556_v36 = vpop.eup %2555  ;;  %v1975_v37 = vadd.f32 1.0, %v2554_v35  ;;  %v2327_v53 = vmul.f32 -1.442695, %v1723_v34 }
 0x2b1   :  { %2164 = vst.msk [vmem:[%s3714_s7 + $0xc8] sm:$0xff] %vm2138_vm2, %v2556_v36  ;;  %v1595_v38 = vpop.xlane.xlu0 %1594 }
 0x2b2   :  { %2569 = vrcp.f32 %v1975_v37  ;;  %v1724_v40 = vadd.f32 %v3305_v25, %v1595_v38 }
 0x2b3   :  { %v2558_v41 = vpop.eup %2557  ;;  %2571 = vpow2.f32 %v2327_v53 }
 0x2b4   :  { %v2560_v42 = vpop.eup %2559  ;;  %v1976_v62 = vadd.f32 1.0, %v2558_v41  ;;  %v2328_v43 = vmul.f32 -1.442695, %v1724_v40 }
 0x2b5   :  { %2165 = vst.msk [vmem:[%s3714_s7 + $0xd0] sm:$0xff] %vm2138_vm2, %v2560_v42  ;;  %v1598_v39 = vpop.xlane.xlu1 %1597 }
 0x2b6   :  { %2573 = vrcp.f32 %v1976_v62  ;;  %v1725_v44 = vadd.f32 %v3305_v25, %v1598_v39 }
 0x2b7   :  { %v2562_v45 = vpop.eup %2561  ;;  %2575 = vpow2.f32 %v2328_v43 }
 0x2b8   :  { %v2564_v51 = vpop.eup %2563  ;;  %v1977_v54 = vadd.f32 1.0, %v2562_v45  ;;  %v2329_v56 = vmul.f32 -1.442695, %v1725_v44 }
 0x2b9   :  { %2166 = vst.msk [vmem:[%s3714_s7 + $0xd8] sm:$0xff] %vm2138_vm2, %v2564_v51  ;;  %v1601_v58 = vpop.xlane.xlu0 %1600 }
 0x2ba   :  { %2577 = vrcp.f32 %v1977_v54  ;;  %v1726_v59 = vadd.f32 %v3305_v25, %v1601_v58 }
 0x2bb   :  { %v2566_v61 = vpop.eup %2565  ;;  %2579 = vpow2.f32 %v2329_v56 }
 0x2bc   :  { %v2568_v63 = vpop.eup %2567  ;;  %2167 = vst.msk [vmem:[%s3714_s7 + $0xe0] sm:$0xff] %vm2138_vm2, %v2566_v61  ;;  %v2330_v0 = vmul.f32 -1.442695, %v1726_v59 }
 0x2bd   :  { %v1978_v2 = vadd.f32 1.0, %v2568_v63  ;;  %v1604_v3 = vpop.xlane.xlu1 %1603 }
 0x2be   :  { %2581 = vpow2.f32 %v2330_v0  ;;  %v1727_v5 = vadd.f32 %v3305_v25, %v1604_v3 }
 0x2bf   :  { %v2570_v4 = vpop.eup %2569  ;;  %2583 = vrcp.f32 %v1978_v2 }
 0x2c0   :  { %v2572_v50 = vpop.eup %2571  ;;  %2168 = vst.msk [vmem:[%s3714_s7 + $0xe8] sm:$0xff] %vm2138_vm2, %v2570_v4  ;;  %v2331_v7 = vmul.f32 -1.442695, %v1727_v5 }
 0x2c1   :  { %v1979_v8 = vadd.f32 1.0, %v2572_v50  ;;  %v1607_v29 = vpop.xlane.xlu0 %1606 }
 0x2c2   :  { %2585 = vpow2.f32 %v2331_v7  ;;  %v1728_v9 = vadd.f32 %v3305_v25, %v1607_v29 }
 0x2c3   :  { %v2574_v6 = vpop.eup %2573  ;;  %2587 = vrcp.f32 %v1979_v8 }
 0x2c4   :  { %v2576_v47 = vpop.eup %2575  ;;  %2169 = vst.msk [vmem:[%s3714_s7 + $0xf0] sm:$0xff] %vm2138_vm2, %v2574_v6  ;;  %v2332_v60 = vmul.f32 -1.442695, %v1728_v9 }
 0x2c5   :  { %v1980_v1 = vadd.f32 1.0, %v2576_v47  ;;  %v1610_v10 = vpop.xlane.xlu1 %1609 }
 0x2c6   :  { %2589 = vpow2.f32 %v2332_v60  ;;  %v1729_v11 = vadd.f32 %v3305_v25, %v1610_v10 }
 0x2c7   :  { %v2578_v49 = vpop.eup %2577  ;;  %2591 = vrcp.f32 %v1980_v1 }
 0x2c8   :  { %v2580_v12 = vpop.eup %2579  ;;  %2170 = vst.msk [vmem:[%s3714_s7 + $0xf8] sm:$0xff] %vm2138_vm2, %v2578_v49  ;;  %v2333_v13 = vmul.f32 -1.442695, %v1729_v11 }
 0x2c9   :  { %v1981_v14 = vadd.f32 1.0, %v2580_v12  ;;  %v1613_v57 = vpop.xlane.xlu0 %1612 }
 0x2ca   :  { %2593 = vpow2.f32 %v2333_v13  ;;  %v1730_v15 = vadd.f32 %v3305_v25, %v1613_v57 }
 0x2cb   :  { %v2582_v16 = vpop.eup %2581  ;;  %2595 = vrcp.f32 %v1981_v14 }
 0x2cc   :  { %v2584_v48 = vpop.eup %2583  ;;  %v1982_v17 = vadd.f32 1.0, %v2582_v16  ;;  %v2334_v18 = vmul.f32 -1.442695, %v1730_v15 }
 0x2cd   :  { %2171 = vst.msk [vmem:[%s3714_s7 + $0x100] sm:$0xff] %vm2138_vm2, %v2584_v48  ;;  %v1616_v19 = vpop.xlane.xlu1 %1615 }
 0x2ce   :  { %2597 = vrcp.f32 %v1982_v17  ;;  %v1731_v20 = vadd.f32 %v3305_v25, %v1616_v19 }
 0x2cf   :  { %v2586_v21 = vpop.eup %2585  ;;  %2599 = vpow2.f32 %v2334_v18 }
 0x2d0   :  { %v2588_v55 = vpop.eup %2587  ;;  %v1983_v22 = vadd.f32 1.0, %v2586_v21  ;;  %v2335_v23 = vmul.f32 -1.442695, %v1731_v20 }
 0x2d1   :  { %2172 = vst.msk [vmem:[%s3714_s7 + $0x108] sm:$0xff] %vm2138_vm2, %v2588_v55  ;;  %v1619_v24 = vpop.xlane.xlu0 %1618 }
 0x2d2   :  { %2601 = vrcp.f32 %v1983_v22  ;;  %v1732_v26 = vadd.f32 %v3305_v25, %v1619_v24 }
 0x2d3   :  { %v2590_v46 = vpop.eup %2589  ;;  %2603 = vpow2.f32 %v2335_v23 }
 0x2d4   :  { %v2592_v28 = vpop.eup %2591  ;;  %v1984_v27 = vadd.f32 1.0, %v2590_v46  ;;  %v2336_v52 = vmul.f32 -1.442695, %v1732_v26 }
 0x2d5   :  { %2173 = vst.msk [vmem:[%s3714_s7 + $0x110] sm:$0xff] %vm2138_vm2, %v2592_v28  ;;  %v1622_v30 = vpop.xlane.xlu1 %1621 }
 0x2d6   :  { %2605 = vrcp.f32 %v1984_v27  ;;  %v1733_v32 = vadd.f32 %v3568_v31, %v1622_v30 }
 0x2d7   :  { %v2594_v33 = vpop.eup %2593  ;;  %2607 = vpow2.f32 %v2336_v52 }
 0x2d8   :  { %v2596_v34 = vpop.eup %2595  ;;  %v1985_v25 = vadd.f32 1.0, %v2594_v33  ;;  %v2337_v35 = vmul.f32 -1.442695, %v1733_v32 }
 0x2d9   :  { %2174 = vst.msk [vmem:[%s3714_s7 + $0x118] sm:$0xff] %vm2138_vm2, %v2596_v34  ;;  %v1625_v36 = vpop.xlane.xlu0 %1624 }
 0x2da   :  { %2609 = vrcp.f32 %v1985_v25  ;;  %v1734_v37 = vadd.f32 %v3568_v31, %v1625_v36 }
 0x2db   :  { %v2598_v53 = vpop.eup %2597  ;;  %2611 = vpow2.f32 %v2337_v35 }
 0x2dc   :  { %v2600_v38 = vpop.eup %2599  ;;  %2175 = vst.msk [vmem:[%s3714_s7 + $0x120] sm:$0xff] %vm2138_vm2, %v2598_v53  ;;  %v2338_v40 = vmul.f32 -1.442695, %v1734_v37 }
 0x2dd   :  { %v1986_v41 = vadd.f32 1.0, %v2600_v38  ;;  %v1628_v42 = vpop.xlane.xlu1 %1627 }
 0x2de   :  { %2613 = vpow2.f32 %v2338_v40  ;;  %v1735_v62 = vadd.f32 %v3568_v31, %v1628_v42 }
 0x2df   :  { %v2602_v43 = vpop.eup %2601  ;;  %2615 = vrcp.f32 %v1986_v41 }
 0x2e0   :  { %v2604_v39 = vpop.eup %2603  ;;  %2176 = vst.msk [vmem:[%s3714_s7 + $0x128] sm:$0xff] %vm2138_vm2, %v2602_v43  ;;  %v2339_v44 = vmul.f32 -1.442695, %v1735_v62 }
 0x2e1   :  { %v1987_v45 = vadd.f32 1.0, %v2604_v39  ;;  %v1631_v51 = vpop.xlane.xlu0 %1630 }
 0x2e2   :  { %2617 = vpow2.f32 %v2339_v44  ;;  %v1736_v54 = vadd.f32 %v3568_v31, %v1631_v51 }
 0x2e3   :  { %v2606_v56 = vpop.eup %2605  ;;  %2619 = vrcp.f32 %v1987_v45 }
 0x2e4   :  { %v2608_v58 = vpop.eup %2607  ;;  %2177 = vst.msk [vmem:[%s3714_s7 + $0x130] sm:$0xff] %vm2138_vm2, %v2606_v56  ;;  %v2340_v59 = vmul.f32 -1.442695, %v1736_v54 }
 0x2e5   :  { %v1988_v61 = vadd.f32 1.0, %v2608_v58  ;;  %v1634_v63 = vpop.xlane.xlu1 %1633 }
 0x2e6   :  { %2621 = vpow2.f32 %v2340_v59  ;;  %v1737_v0 = vadd.f32 %v3568_v31, %v1634_v63 }
 0x2e7   :  { %v2610_v2 = vpop.eup %2609  ;;  %2623 = vrcp.f32 %v1988_v61 }
 0x2e8   :  { %v2612_v3 = vpop.eup %2611  ;;  %2178 = vst.msk [vmem:[%s3714_s7 + $0x138] sm:$0xff] %vm2138_vm2, %v2610_v2  ;;  %v2341_v5 = vmul.f32 -1.442695, %v1737_v0 }
 0x2e9   :  { %v1989_v4 = vadd.f32 1.0, %v2612_v3  ;;  %v1637_v50 = vpop.xlane.xlu0 %1636 }
 0x2ea   :  { %2625 = vpow2.f32 %v2341_v5  ;;  %v1738_v7 = vadd.f32 %v3568_v31, %v1637_v50 }
 0x2eb   :  { %v2614_v8 = vpop.eup %2613  ;;  %2627 = vrcp.f32 %v1989_v4 }
 0x2ec   :  { %v2616_v29 = vpop.eup %2615  ;;  %v1990_v9 = vadd.f32 1.0, %v2614_v8  ;;  %v2342_v6 = vmul.f32 -1.442695, %v1738_v7 }
 0x2ed   :  { %2179 = vst.msk [vmem:[%s3714_s7 + $0x140] sm:$0xff] %vm2138_vm2, %v2616_v29  ;;  %v1640_v47 = vpop.xlane.xlu1 %1639 }
 0x2ee   :  { %2629 = vrcp.f32 %v1990_v9  ;;  %v1739_v60 = vadd.f32 %v3568_v31, %v1640_v47 }
 0x2ef   :  { %v2618_v1 = vpop.eup %2617  ;;  %2631 = vpow2.f32 %v2342_v6 }
 0x2f0   :  { %v2620_v10 = vpop.eup %2619  ;;  %v1991_v11 = vadd.f32 1.0, %v2618_v1  ;;  %v2343_v49 = vmul.f32 -1.442695, %v1739_v60 }
 0x2f1   :  { %2180 = vst.msk [vmem:[%s3714_s7 + $0x148] sm:$0xff] %vm2138_vm2, %v2620_v10  ;;  %v1643_v12 = vpop.xlane.xlu0 %1642 }
 0x2f2   :  { %2633 = vrcp.f32 %v1991_v11  ;;  %v1740_v13 = vadd.f32 %v3568_v31, %v1643_v12 }
 0x2f3   :  { %v2622_v14 = vpop.eup %2621  ;;  %2635 = vpow2.f32 %v2343_v49 }
 0x2f4   :  { %v2624_v57 = vpop.eup %2623  ;;  %v1992_v15 = vadd.f32 1.0, %v2622_v14  ;;  %v2344_v16 = vmul.f32 -1.442695, %v1740_v13 }
 0x2f5   :  { %2181 = vst.msk [vmem:[%s3714_s7 + $0x150] sm:$0xff] %vm2138_vm2, %v2624_v57  ;;  %v1646_v48 = vpop.xlane.xlu1 %1645 }
 0x2f6   :  { %2637 = vrcp.f32 %v1992_v15  ;;  %v1741_v17 = vadd.f32 %v3568_v31, %v1646_v48 }
 0x2f7   :  { %v2626_v18 = vpop.eup %2625  ;;  %2639 = vpow2.f32 %v2344_v16 }
 0x2f8   :  { %v2628_v19 = vpop.eup %2627  ;;  %v1993_v20 = vadd.f32 1.0, %v2626_v18  ;;  %v2345_v21 = vmul.f32 -1.442695, %v1741_v17 }
 0x2f9   :  { %2182 = vst.msk [vmem:[%s3714_s7 + $0x158] sm:$0xff] %vm2138_vm2, %v2628_v19  ;;  %v1649_v55 = vpop.xlane.xlu0 %1648 }
 0x2fa   :  { %2641 = vrcp.f32 %v1993_v20  ;;  %v1742_v22 = vadd.f32 %v3568_v31, %v1649_v55 }
 0x2fb   :  { %v2630_v23 = vpop.eup %2629  ;;  %2643 = vpow2.f32 %v2345_v21 }
 0x2fc   :  { %v2632_v24 = vpop.eup %2631  ;;  %2183 = vst.msk [vmem:[%s3714_s7 + $0x160] sm:$0xff] %vm2138_vm2, %v2630_v23  ;;  %v2346_v26 = vmul.f32 -1.442695, %v1742_v22 }
 0x2fd   :  { %v1994_v46 = vadd.f32 1.0, %v2632_v24  ;;  %v1652_v28 = vpop.xlane.xlu1 %1651 }
 0x2fe   :  { %2645 = vpow2.f32 %v2346_v26  ;;  %v1743_v27 = vadd.f32 %v3568_v31, %v1652_v28 }
 0x2ff   :  { %v2634_v52 = vpop.eup %2633  ;;  %2647 = vrcp.f32 %v1994_v46 }
 0x300   :  { %v2636_v30 = vpop.eup %2635  ;;  %2184 = vst.msk [vmem:[%s3714_s7 + $0x168] sm:$0xff] %vm2138_vm2, %v2634_v52  ;;  %v2347_v32 = vmul.f32 -1.442695, %v1743_v27 }
 0x301   :  { %v1995_v33 = vadd.f32 1.0, %v2636_v30  ;;  %v1655_v34 = vpop.xlane.xlu0 %1654 }
 0x302   :  { %2649 = vpow2.f32 %v2347_v32  ;;  %v1744_v25 = vadd.f32 %v3568_v31, %v1655_v34 }
 0x303   :  { %v2638_v35 = vpop.eup %2637  ;;  %2651 = vrcp.f32 %v1995_v33 }
 0x304   :  { %v2640_v36 = vpop.eup %2639  ;;  %2185 = vst.msk [vmem:[%s3714_s7 + $0x170] sm:$0xff] %vm2138_vm2, %v2638_v35  ;;  %v2348_v37 = vmul.f32 -1.442695, %v1744_v25 }
 0x305   :  { %v1996_v53 = vadd.f32 1.0, %v2640_v36  ;;  %v1658_v38 = vpop.xlane.xlu1 %1657 }
 0x306   :  { %2653 = vpow2.f32 %v2348_v37  ;;  %v1745_v40 = vadd.f32 %v3568_v31, %v1658_v38 }
 0x307   :  { %v2642_v41 = vpop.eup %2641  ;;  %2655 = vrcp.f32 %v1996_v53 }
 0x308   :  { %v2644_v42 = vpop.eup %2643  ;;  %2186 = vst.msk [vmem:[%s3714_s7 + $0x178] sm:$0xff] %vm2138_vm2, %v2642_v41  ;;  %v2349_v62 = vmul.f32 -1.442695, %v1745_v40 }
 0x309   :  { %v1997_v43 = vadd.f32 1.0, %v2644_v42  ;;  %v1661_v39 = vpop.xlane.xlu0 %1660 }
 0x30a   :  { %2657 = vpow2.f32 %v2349_v62  ;;  %v1746_v44 = vadd.f32 %v3568_v31, %v1661_v39 }
 0x30b   :  { %v2646_v45 = vpop.eup %2645  ;;  %2659 = vrcp.f32 %v1997_v43 }
 0x30c   :  { %v2648_v51 = vpop.eup %2647  ;;  %v1998_v54 = vadd.f32 1.0, %v2646_v45  ;;  %v2350_v56 = vmul.f32 -1.442695, %v1746_v44 }
 0x30d   :  { %2187 = vst.msk [vmem:[%s3714_s7 + $0x180] sm:$0xff] %vm2138_vm2, %v2648_v51  ;;  %v1664_v58 = vpop.xlane.xlu1 %1663 }
 0x30e   :  { %2661 = vrcp.f32 %v1998_v54  ;;  %v1747_v59 = vadd.f32 %v3568_v31, %v1664_v58 }
 0x30f   :  { %v2650_v61 = vpop.eup %2649  ;;  %2663 = vpow2.f32 %v2350_v56 }
 0x310   :  { %v2652_v63 = vpop.eup %2651  ;;  %v1999_v0 = vadd.f32 1.0, %v2650_v61  ;;  %v2351_v2 = vmul.f32 -1.442695, %v1747_v59 }
 0x311   :  { %2188 = vst.msk [vmem:[%s3714_s7 + $0x188] sm:$0xff] %vm2138_vm2, %v2652_v63  ;;  %v1667_v3 = vpop.xlane.xlu0 %1666 }
 0x312   :  { %2665 = vrcp.f32 %v1999_v0  ;;  %v1748_v5 = vadd.f32 %v3568_v31, %v1667_v3 }
 0x313   :  { %v2654_v4 = vpop.eup %2653  ;;  %2667 = vpow2.f32 %v2351_v2 }
 0x314   :  { %v2656_v50 = vpop.eup %2655  ;;  %v2000_v7 = vadd.f32 1.0, %v2654_v4  ;;  %v2352_v8 = vmul.f32 -1.442695, %v1748_v5 }
 0x315   :  { %2189 = vst.msk [vmem:[%s3714_s7 + $0x190] sm:$0xff] %vm2138_vm2, %v2656_v50  ;;  %v1670_v29 = vpop.xlane.xlu1 %1669 }
 0x316   :  { %2669 = vrcp.f32 %v2000_v7  ;;  %v1749_v9 = vadd.f32 %v3568_v31, %v1670_v29 }
 0x317   :  { %v2658_v6 = vpop.eup %2657  ;;  %2671 = vpow2.f32 %v2352_v8 }
 0x318   :  { %v2660_v47 = vpop.eup %2659  ;;  %v2001_v60 = vadd.f32 1.0, %v2658_v6  ;;  %v2353_v1 = vmul.f32 -1.442695, %v1749_v9 }
 0x319   :  { %2190 = vst.msk [vmem:[%s3714_s7 + $0x198] sm:$0xff] %vm2138_vm2, %v2660_v47  ;;  %v1673_v10 = vpop.xlane.xlu0 %1672 }
 0x31a   :  { %2673 = vrcp.f32 %v2001_v60  ;;  %v1750_v11 = vadd.f32 %v3568_v31, %v1673_v10 }
 0x31b   :  { %v2662_v49 = vpop.eup %2661  ;;  %2675 = vpow2.f32 %v2353_v1 }
 0x31c   :  { %v2664_v12 = vpop.eup %2663  ;;  %2191 = vst.msk [vmem:[%s3714_s7 + $0x1a0] sm:$0xff] %vm2138_vm2, %v2662_v49  ;;  %v2354_v13 = vmul.f32 -1.442695, %v1750_v11 }
 0x31d   :  { %v2002_v14 = vadd.f32 1.0, %v2664_v12  ;;  %v1676_v57 = vpop.xlane.xlu1 %1675 }
 0x31e   :  { %2677 = vpow2.f32 %v2354_v13  ;;  %v1751_v15 = vadd.f32 %v3568_v31, %v1676_v57 }
 0x31f   :  { %v2666_v16 = vpop.eup %2665  ;;  %2679 = vrcp.f32 %v2002_v14 }
 0x320   :  { %v2668_v48 = vpop.eup %2667  ;;  %2192 = vst.msk [vmem:[%s3714_s7 + $0x1a8] sm:$0xff] %vm2138_vm2, %v2666_v16  ;;  %v2355_v17 = vmul.f32 -1.442695, %v1751_v15 }
 0x321   :  { %v2003_v18 = vadd.f32 1.0, %v2668_v48  ;;  %v1679_v19 = vpop.xlane.xlu0 %1678 }
 0x322   :  { %2681 = vpow2.f32 %v2355_v17  ;;  %v1752_v20 = vadd.f32 %v3568_v31, %v1679_v19 }
 0x323   :  { %v2670_v21 = vpop.eup %2669  ;;  %2683 = vrcp.f32 %v2003_v18 }
 0x324   :  { %v2672_v55 = vpop.eup %2671  ;;  %2193 = vst.msk [vmem:[%s3714_s7 + $0x1b0] sm:$0xff] %vm2138_vm2, %v2670_v21  ;;  %v2356_v22 = vmul.f32 -1.442695, %v1752_v20 }
 0x325   :  { %v2004_v23 = vadd.f32 1.0, %v2672_v55  ;;  %v1682_v24 = vpop.xlane.xlu1 %1681 }
 0x326   :  { %2685 = vpow2.f32 %v2356_v22  ;;  %v1753_v26 = vadd.f32 %v3568_v31, %v1682_v24 }
 0x327   :  { %v2674_v46 = vpop.eup %2673  ;;  %2687 = vrcp.f32 %v2004_v23 }
 0x328   :  { %v2676_v28 = vpop.eup %2675  ;;  %2194 = vst.msk [vmem:[%s3714_s7 + $0x1b8] sm:$0xff] %vm2138_vm2, %v2674_v46  ;;  %v2357_v27 = vmul.f32 -1.442695, %v1753_v26 }
 0x329   :  { %v2005_v52 = vadd.f32 1.0, %v2676_v28 }
 0x32a   :  { %2689 = vpow2.f32 %v2357_v27 }
 0x32b   :  { %v2678_v30 = vpop.eup %2677  ;;  %2691 = vrcp.f32 %v2005_v52 }
 0x32c   :  { %v2680_v32 = vpop.eup %2679  ;;  %v2006_v33 = vadd.f32 1.0, %v2678_v30 }
 0x32d   :  { %2195 = vst.msk [vmem:[%s3714_s7 + $0x1c0] sm:$0xff] %vm2138_vm2, %v2680_v32 }
 0x32e   :  { %2693 = vrcp.f32 %v2006_v33 }
 0x32f   :  { %v2682_v31 = vpop.eup %2681 }
 0x330   :  { %v2684_v34 = vpop.eup %2683  ;;  %v2007_v25 = vadd.f32 1.0, %v2682_v31 }
 0x331   :  { %2196 = vst.msk [vmem:[%s3714_s7 + $0x1c8] sm:$0xff] %vm2138_vm2, %v2684_v34 }
 0x332   :  { %2695 = vrcp.f32 %v2007_v25 }
 0x333   :  { %v2686_v35 = vpop.eup %2685 }
 0x334   :  { %v2688_v36 = vpop.eup %2687  ;;  %v2008_v37 = vadd.f32 1.0, %v2686_v35 }
 0x335   :  { %2197 = vst.msk [vmem:[%s3714_s7 + $0x1d0] sm:$0xff] %vm2138_vm2, %v2688_v36 }
 0x336   :  { %2697 = vrcp.f32 %v2008_v37 }
 0x337   :  { %v2690_v53 = vpop.eup %2689 }
 0x338   :  { %v2692_v38 = vpop.eup %2691  ;;  %v2009_v40 = vadd.f32 1.0, %v2690_v53 }
 0x339   :  { %2198 = vst.msk [vmem:[%s3714_s7 + $0x1d8] sm:$0xff] %vm2138_vm2, %v2692_v38 }
 0x33a   :  { %2699 = vrcp.f32 %v2009_v40 }
 0x33b   :  { %v2694_v41 = vpop.eup %2693 }
 0x33c   :  { %2199 = vst.msk [vmem:[%s3714_s7 + $0x1e0] sm:$0xff] %vm2138_vm2, %v2694_v41 }
 0x33f   :  { %v2696_v42 = vpop.eup %2695 }
 0x340   :  { %2200 = vst.msk [vmem:[%s3714_s7 + $0x1e8] sm:$0xff] %vm2138_vm2, %v2696_v42 }
 0x343   :  { %v2698_v62 = vpop.eup %2697 }
 0x344   :  { %2201 = vst.msk [vmem:[%s3714_s7 + $0x1f0] sm:$0xff] %vm2138_vm2, %v2698_v62 }
 0x347   :  { %v2700_v43 = vpop.eup %2699 }
 0x348   :  { %2202 = vst.msk [vmem:[%s3714_s7 + $0x1f8] sm:$0xff] %vm2138_vm2, %v2700_v43 }

</bundles_post_ra>
